<compile_context>
chip_gen: v7x
topology: tpu7x:2x2x1
jax: 0.10.0
libtpu: 0.0.40
codegen_flags: <defaults>
</compile_context>

<pallas_src>
import functools
import math

import jax
import jax.numpy as jnp
from jax.experimental import pallas as pl
from jax.experimental.pallas import tpu as pltpu

LN_EPS = 1e-12  # HF BERT LayerNorm eps


# ----------------------------------------------------------------------------
# In-kernel helpers (f32 elementwise math -> VPU/EUP, v5e-safe)
# ----------------------------------------------------------------------------
def _layernorm(x, gamma, beta, eps):
    mu = jnp.mean(x, axis=-1, keepdims=True)
    xc = x - mu
    var = jnp.mean(xc * xc, axis=-1, keepdims=True)
    return xc * jax.lax.rsqrt(var + eps) * gamma + beta


def _erf(x):
    # Abramowitz & Stegun 7.1.26 polynomial (|err| < 1.5e-7): only mul/add/exp/select,
    # keeps HF BERT's exact (erf) GELU semantics well below bf16 matmul noise.
    a1, a2, a3, a4, a5 = (0.254829592, -0.284496736, 1.421413741,
                          -1.453152027, 1.061405429)
    p = 0.3275911
    ax = jnp.abs(x)
    t = 1.0 / (1.0 + p * ax)
    poly = ((((a5 * t + a4) * t + a3) * t + a2) * t + a1) * t
    y = 1.0 - poly * jnp.exp(-(ax * ax))
    return jnp.where(x < 0.0, -y, y)


def _gelu_exact(x):
    return 0.5 * x * (1.0 + _erf(x * 0.7071067811865476))


# ----------------------------------------------------------------------------
# Single fused kernel: embeddings+LN -> all encoder layers -> Linear+ReLU head
# ----------------------------------------------------------------------------
def _bert_forward_kernel(word_ref, bias_ref, pos_ref, type_ref, eg_ref, eb_ref,
                         wqkv_ref, bqkv_ref, wo_ref, bo_ref, ln1g_ref, ln1b_ref,
                         wff1_ref, bff1_ref, wff2_ref, bff2_ref, ln2g_ref,
                         ln2b_ref, hw_ref, hb_ref, o_ref,
                         *, num_layers, num_heads, eps):
    S, E = pos_ref.shape
    H = num_heads

    # ---- embeddings: word + position + token_type(=0) row, then LayerNorm ----
    x = word_ref[0] + pos_ref[...] + type_ref[...]            # (S, E) f32
    x = _layernorm(x, eg_ref[...], eb_ref[...], eps)

    bias_row = bias_ref[0]                                    # (1, S) additive mask

    # ---- encoder layers: weights stay VMEM-resident, residual never hits HBM ----
    for l in range(num_layers):                               # small static L
        x_bf = x.astype(jnp.bfloat16)

        # Head-major fused Q|K|V: one batched MXU dot over the 3H per-head weights.
        # (1/sqrt(head_dim) pre-folded into the Q weights/bias on the wrapper side.)
        xh = jnp.broadcast_to(x_bf, (3 * H, S, E))
        qkv = jnp.einsum("hse,hed->hsd", xh, wqkv_ref[l],
                         preferred_element_type=jnp.float32) + bqkv_ref[l]
        qkv = qkv.astype(jnp.bfloat16)                        # single cast for q,k,v
        q, k, v = qkv[:H], qkv[H:2 * H], qkv[2 * H:]          # leading-dim slices only

        # Batched-over-heads attention (no per-head loop, no concat).
        s = jnp.einsum("hsd,htd->hst", q, k,
                       preferred_element_type=jnp.float32)    # (H, S, S) f32
        s = s + bias_row                                      # broadcast over rows/heads
        m = jnp.max(s, axis=-1, keepdims=True)
        p = jnp.exp(s - m)                                    # f32 on EUP
        p = p * pl.reciprocal(jnp.sum(p, axis=-1, keepdims=True), approx=True)
        ctx = jnp.einsum("hst,htd->hsd", p.astype(jnp.bfloat16), v,
                         preferred_element_type=jnp.float32)  # (H, S, Dh)

        # O-projection accumulated per head against (H, Dh, E)-reshaped Wo.
        attn = jnp.einsum("hsd,hde->hse", ctx.astype(jnp.bfloat16), wo_ref[l],
                          preferred_element_type=jnp.float32)  # (H, S, E)
        attn = jnp.sum(attn, axis=0) + bo_ref[l]               # (S, E)
        h1 = _layernorm(attn + x, ln1g_ref[l], ln1b_ref[l], eps)

        # FFN (exact GELU) + residual + LayerNorm2.
        inter = jnp.dot(h1.astype(jnp.bfloat16), wff1_ref[l],
                        preferred_element_type=jnp.float32) + bff1_ref[l]
        inter = _gelu_exact(inter)
        ffn = jnp.dot(inter.astype(jnp.bfloat16), wff2_ref[l],
                      preferred_element_type=jnp.float32) + bff2_ref[l]
        x = _layernorm(ffn + h1, ln2g_ref[l], ln2b_ref[l], eps)

    # ---- head: full-S (sublane-aligned) Linear + ReLU; Dropout(p=0) is identity.
    # The output[:, 1:-1, :] CLS/SEP drop is a cheap slice done in the wrapper.
    y = jnp.dot(x.astype(jnp.bfloat16), hw_ref[...],
                preferred_element_type=jnp.float32) + hb_ref[...]
    o_ref[0] = jnp.maximum(y, 0.0)


def _const_spec(a):
    nd = a.ndim

    def idx(b):
        return (0,) * nd

    return pl.BlockSpec(a.shape, idx)


def bert_forward_fused(params, word, bias):
    cfg = params["cfg"]
    B, S, E = word.shape
    HS = params["lin_w"].shape[1]

    consts = [
        params["pos_emb"][:S], params["type_emb"][0:1],
        params["emb_ln_g"], params["emb_ln_b"],
        params["wqkv_h"], params["bqkv_h"], params["wo_h"], params["bo"],
        params["ln1_g"], params["ln1_b"],
        params["wff1"], params["bff1"], params["wff2"], params["bff2"],
        params["ln2_g"], params["ln2_b"],
        params["lin_w"], params["lin_b"],
    ]

    kernel = functools.partial(
        _bert_forward_kernel, num_layers=cfg["num_layers"],
        num_heads=cfg["num_heads"], eps=LN_EPS)

    return pl.pallas_call(
        kernel,
        out_shape=jax.ShapeDtypeStruct((B, S, HS), jnp.float32),
        grid=(B,),
        in_specs=[
            pl.BlockSpec((1, S, E), lambda b: (b, 0, 0)),   # word embeddings (per batch)
            pl.BlockSpec((1, 1, S), lambda b: (b, 0, 0)),   # additive attention mask
        ] + [_const_spec(a) for a in consts],               # weights: constant index maps
        out_specs=pl.BlockSpec((1, S, HS), lambda b: (b, 0, 0)),
        compiler_params=pltpu.CompilerParams(
            dimension_semantics=("parallel",),              # megacore split on v7x
            vmem_limit_bytes=32 * 1024 * 1024),
    )(word, bias, *consts)


# ----------------------------------------------------------------------------
# Forward pass (glue kept to: mask build, word-embedding gather, final slice)
# ----------------------------------------------------------------------------
def bert_sequence_model_forward(params, input_ids, input_len):
    del input_len                                   # unused by the torch forward too
    B, S = input_ids.shape

    # attention_mask = (input != 0).float(); HF additive mask = (1 - m) * -1e4
    attention_mask = (input_ids != 0).astype(jnp.float32)
    bias = ((1.0 - attention_mask) * -10000.0).reshape(B, 1, S)

    # TODO(synk): word-embedding table gather is a data-dependent lookup; it stays in XLA.
    word = params["word_emb"][input_ids]            # (B, S, E) f32

    out = bert_forward_fused(params, word, bias)    # (B, S, hidden_size)
    # cls_token = out[:, 0, :] is computed but unused by the torch module.
    return out[:, 1:-1, :]                          # drop [CLS]/[SEP] rows


# ----------------------------------------------------------------------------
# Deterministic synthetic parameters, pre-packed for the kernel:
#   * per-layer weights stacked along a leading L axis
#   * Q|K|V as head-major (3H, E, Dh) with 1/sqrt(Dh) folded into the Q block
#   * Wo reshaped to (H, Dh, E); matmul weights bf16, biases/LN params f32 rows
# ----------------------------------------------------------------------------
def init_params(key, *, vocab=100, max_pos=16, embed_dim=32, num_heads=2,
                ffn_dim=64, num_layers=2, hidden_size=32):
    E, H, F = embed_dim, num_heads, ffn_dim
    Dh = E // H
    keys = iter(jax.random.split(key, 4 + num_layers * 6))

    def w(shape):
        return 0.02 * jax.random.normal(next(keys), shape, dtype=jnp.float32)

    zeros = lambda n: jnp.zeros((1, n), jnp.float32)
    ones = lambda n: jnp.ones((1, n), jnp.float32)
    scale = 1.0 / math.sqrt(Dh)

    def to_heads(m):                      # (E, H*Dh) -> (H, E, Dh), contiguous head split
        return m.reshape(E, H, Dh).transpose(1, 0, 2)

    wqkv_h, bqkv_h, wo_h, bo = [], [], [], []
    l1g, l1b, wff1, bff1, wff2, bff2, l2g, l2b = [], [], [], [], [], [], [], []
    for _ in range(num_layers):
        wq, wk, wv, wo = w((E, E)), w((E, E)), w((E, E)), w((E, E))
        # 1/sqrt(Dh) folded into Q weights (a nonzero Q bias would be scaled likewise).
        wqkv_h.append(jnp.concatenate(
            [to_heads(wq * scale), to_heads(wk), to_heads(wv)], axis=0
        ).astype(jnp.bfloat16))                                 # (3H, E, Dh)
        bqkv_h.append(jnp.zeros((3 * H, 1, Dh), jnp.float32))
        wo_h.append(wo.reshape(H, Dh, E).astype(jnp.bfloat16))  # (H, Dh, E)
        bo.append(zeros(E))
        l1g.append(ones(E)); l1b.append(zeros(E))
        wff1.append(w((E, F)).astype(jnp.bfloat16)); bff1.append(zeros(F))
        wff2.append(w((F, E)).astype(jnp.bfloat16)); bff2.append(zeros(E))
        l2g.append(ones(E)); l2b.append(zeros(E))

    stack = lambda xs: jnp.stack(xs, axis=0)
    return {
        "cfg": dict(embed_dim=E, num_heads=H, head_dim=Dh, ffn_dim=F,
                    num_layers=num_layers, hidden_size=hidden_size),
        "word_emb": w((vocab, E)),
        "pos_emb": w((max_pos, E)),
        "type_emb": w((2, E)),
        "emb_ln_g": ones(E), "emb_ln_b": zeros(E),
        "wqkv_h": stack(wqkv_h), "bqkv_h": stack(bqkv_h),
        "wo_h": stack(wo_h), "bo": stack(bo),
        "ln1_g": stack(l1g), "ln1_b": stack(l1b),
        "wff1": stack(wff1), "bff1": stack(bff1),
        "wff2": stack(wff2), "bff2": stack(bff2),
        "ln2_g": stack(l2g), "ln2_b": stack(l2b),
        "lin_w": w((E, hidden_size)).astype(jnp.bfloat16),
        "lin_b": zeros(hidden_size),
    }


if __name__ == "__main__":
    B, S, VOCAB = 2, 8, 100
    key = jax.random.PRNGKey(0)
    k_param, k_ids = jax.random.split(key)

    params = init_params(k_param, vocab=VOCAB, max_pos=16, embed_dim=32,
                         num_heads=2, ffn_dim=64, num_layers=2, hidden_size=32)

    # token ids in [1, vocab); zero-out trailing positions of row 1 as padding
    input_ids = jax.random.randint(k_ids, (B, S), 1, VOCAB, dtype=jnp.int32)
    input_ids = input_ids.at[1, -2:].set(0)
    input_len = jnp.array([S, S - 2], dtype=jnp.int32)

    fwd = jax.jit(functools.partial(bert_sequence_model_forward, params))
    out = fwd(input_ids, input_len)
    out = jax.block_until_ready(out)

    assert out.shape == (B, S - 2, 32), out.shape
    assert out.dtype == jnp.float32
    print("KERNEL_OK")
</pallas_src>

<mosaic_0001>
module attributes {stable_mosaic.version = 11 : i64} {
  func.func @_bert_forward_kernel(%arg0: i32, %arg1: memref<1x8x32xf32, #tpu.memory_space<vmem>>, %arg2: memref<1x1x8xf32, #tpu.memory_space<vmem>>, %arg3: memref<8x32xf32, #tpu.memory_space<vmem>>, %arg4: memref<1x32xf32, #tpu.memory_space<vmem>>, %arg5: memref<1x32xf32, #tpu.memory_space<vmem>>, %arg6: memref<1x32xf32, #tpu.memory_space<vmem>>, %arg7: memref<2x6x32x16xbf16, #tpu.memory_space<vmem>>, %arg8: memref<2x6x1x16xf32, #tpu.memory_space<vmem>>, %arg9: memref<2x2x16x32xbf16, #tpu.memory_space<vmem>>, %arg10: memref<2x1x32xf32, #tpu.memory_space<vmem>>, %arg11: memref<2x1x32xf32, #tpu.memory_space<vmem>>, %arg12: memref<2x1x32xf32, #tpu.memory_space<vmem>>, %arg13: memref<2x32x64xbf16, #tpu.memory_space<vmem>>, %arg14: memref<2x1x64xf32, #tpu.memory_space<vmem>>, %arg15: memref<2x64x32xbf16, #tpu.memory_space<vmem>>, %arg16: memref<2x1x32xf32, #tpu.memory_space<vmem>>, %arg17: memref<2x1x32xf32, #tpu.memory_space<vmem>>, %arg18: memref<2x1x32xf32, #tpu.memory_space<vmem>>, %arg19: memref<32x32xbf16, #tpu.memory_space<vmem>>, %arg20: memref<1x32xf32, #tpu.memory_space<vmem>>, %arg21: memref<1x8x32xf32, #tpu.memory_space<vmem>>) attributes {dimension_semantics = [#tpu.dimension_semantics<parallel>], iteration_bounds = array<i64: 2>, scalar_prefetch = 0 : i64, scratch_operands = 0 : i64, tpu.core_type = #tpu.core_type<tc>, window_params = [{transform_indices = @transform_0, window_bounds = array<i64: 1, 8, 32>}, {transform_indices = @transform_1, window_bounds = array<i64: 1, 1, 8>}, {pipeline_mode = #tpu.pipeline_mode<synchronous>, transform_indices = @transform_2, window_bounds = array<i64: 8, 32>}, {pipeline_mode = #tpu.pipeline_mode<synchronous>, transform_indices = @transform_3, window_bounds = array<i64: 1, 32>}, {pipeline_mode = #tpu.pipeline_mode<synchronous>, transform_indices = @transform_4, window_bounds = array<i64: 1, 32>}, {pipeline_mode = #tpu.pipeline_mode<synchronous>, transform_indices = @transform_5, window_bounds = array<i64: 1, 32>}, {pipeline_mode = #tpu.pipeline_mode<synchronous>, transform_indices = @transform_6, window_bounds = array<i64: 2, 6, 32, 16>}, {pipeline_mode = #tpu.pipeline_mode<synchronous>, transform_indices = @transform_7, window_bounds = array<i64: 2, 6, 1, 16>}, {pipeline_mode = #tpu.pipeline_mode<synchronous>, transform_indices = @transform_8, window_bounds = array<i64: 2, 2, 16, 32>}, {pipeline_mode = #tpu.pipeline_mode<synchronous>, transform_indices = @transform_9, window_bounds = array<i64: 2, 1, 32>}, {pipeline_mode = #tpu.pipeline_mode<synchronous>, transform_indices = @transform_10, window_bounds = array<i64: 2, 1, 32>}, {pipeline_mode = #tpu.pipeline_mode<synchronous>, transform_indices = @transform_11, window_bounds = array<i64: 2, 1, 32>}, {pipeline_mode = #tpu.pipeline_mode<synchronous>, transform_indices = @transform_12, window_bounds = array<i64: 2, 32, 64>}, {pipeline_mode = #tpu.pipeline_mode<synchronous>, transform_indices = @transform_13, window_bounds = array<i64: 2, 1, 64>}, {pipeline_mode = #tpu.pipeline_mode<synchronous>, transform_indices = @transform_14, window_bounds = array<i64: 2, 64, 32>}, {pipeline_mode = #tpu.pipeline_mode<synchronous>, transform_indices = @transform_15, window_bounds = array<i64: 2, 1, 32>}, {pipeline_mode = #tpu.pipeline_mode<synchronous>, transform_indices = @transform_16, window_bounds = array<i64: 2, 1, 32>}, {pipeline_mode = #tpu.pipeline_mode<synchronous>, transform_indices = @transform_17, window_bounds = array<i64: 2, 1, 32>}, {pipeline_mode = #tpu.pipeline_mode<synchronous>, transform_indices = @transform_18, window_bounds = array<i64: 32, 32>}, {pipeline_mode = #tpu.pipeline_mode<synchronous>, transform_indices = @transform_19, window_bounds = array<i64: 1, 32>}, {transform_indices = @transform_20, window_bounds = array<i64: 1, 8, 32>}]} {
    %c0 = arith.constant 0 : index
    %c0_0 = arith.constant 0 : index
    %c0_1 = arith.constant 0 : index
    %0 = vector.load %arg1[%c0, %c0_0, %c0_1] : memref<1x8x32xf32, #tpu.memory_space<vmem>>, vector<1x8x32xf32>
    %1 = vector.shape_cast %0 : vector<1x8x32xf32> to vector<8x32xf32>
    %c0_2 = arith.constant 0 : index
    %c0_3 = arith.constant 0 : index
    %2 = vector.load %arg3[%c0_2, %c0_3] : memref<8x32xf32, #tpu.memory_space<vmem>>, vector<8x32xf32>
    %3 = arith.addf %1, %2 : vector<8x32xf32>
    %c0_4 = arith.constant 0 : index
    %c0_5 = arith.constant 0 : index
    %4 = vector.load %arg4[%c0_4, %c0_5] : memref<1x32xf32, #tpu.memory_space<vmem>>, vector<1x32xf32>
    %5 = vector.broadcast %4 : vector<1x32xf32> to vector<8x32xf32>
    %6 = arith.addf %3, %5 : vector<8x32xf32>
    %c0_6 = arith.constant 0 : index
    %c0_7 = arith.constant 0 : index
    %7 = vector.load %arg5[%c0_6, %c0_7] : memref<1x32xf32, #tpu.memory_space<vmem>>, vector<1x32xf32>
    %c0_8 = arith.constant 0 : index
    %c0_9 = arith.constant 0 : index
    %8 = vector.load %arg6[%c0_8, %c0_9] : memref<1x32xf32, #tpu.memory_space<vmem>>, vector<1x32xf32>
    %cst = arith.constant dense<0.000000e+00> : vector<8xf32>
    %9 = vector.multi_reduction <add>, %6, %cst [1] : vector<8x32xf32> to vector<8xf32>
    %10 = vector.shape_cast %9 : vector<8xf32> to vector<8x1xf32>
    %cst_10 = arith.constant 3.200000e+01 : f32
    %11 = vector.broadcast %cst_10 : f32 to vector<8x1xf32>
    %12 = arith.divf %10, %11 : vector<8x1xf32>
    %13 = vector.broadcast %12 : vector<8x1xf32> to vector<8x32xf32>
    %14 = arith.subf %6, %13 : vector<8x32xf32>
    %15 = arith.mulf %14, %14 : vector<8x32xf32>
    %cst_11 = arith.constant dense<0.000000e+00> : vector<8xf32>
    %16 = vector.multi_reduction <add>, %15, %cst_11 [1] : vector<8x32xf32> to vector<8xf32>
    %17 = vector.shape_cast %16 : vector<8xf32> to vector<8x1xf32>
    %cst_12 = arith.constant 3.200000e+01 : f32
    %18 = vector.broadcast %cst_12 : f32 to vector<8x1xf32>
    %19 = arith.divf %17, %18 : vector<8x1xf32>
    %cst_13 = arith.constant 9.99999996E-13 : f32
    %20 = vector.broadcast %cst_13 : f32 to vector<8x1xf32>
    %21 = arith.addf %19, %20 : vector<8x1xf32>
    %22 = math.rsqrt %21 : vector<8x1xf32>
    %23 = vector.broadcast %22 : vector<8x1xf32> to vector<8x32xf32>
    %24 = arith.mulf %14, %23 : vector<8x32xf32>
    %25 = vector.broadcast %7 : vector<1x32xf32> to vector<8x32xf32>
    %26 = arith.mulf %24, %25 : vector<8x32xf32>
    %27 = vector.broadcast %8 : vector<1x32xf32> to vector<8x32xf32>
    %28 = arith.addf %26, %27 : vector<8x32xf32>
    %c0_14 = arith.constant 0 : index
    %c0_15 = arith.constant 0 : index
    %c0_16 = arith.constant 0 : index
    %29 = vector.load %arg2[%c0_14, %c0_15, %c0_16] : memref<1x1x8xf32, #tpu.memory_space<vmem>>, vector<1x1x8xf32>
    %30 = vector.shape_cast %29 : vector<1x1x8xf32> to vector<1x8xf32>
    %31 = arith.truncf %28 : vector<8x32xf32> to vector<8x32xbf16>
    %32 = vector.shape_cast %31 : vector<8x32xbf16> to vector<1x8x32xbf16>
    %33 = vector.broadcast %32 : vector<1x8x32xbf16> to vector<6x8x32xbf16>
    %c0_17 = arith.constant 0 : index
    %c0_18 = arith.constant 0 : index
    %c0_19 = arith.constant 0 : index
    %c0_20 = arith.constant 0 : index
    %34 = vector.load %arg7[%c0_17, %c0_18, %c0_19, %c0_20] : memref<2x6x32x16xbf16, #tpu.memory_space<vmem>>, vector<1x6x32x16xbf16>
    %35 = vector.shape_cast %34 : vector<1x6x32x16xbf16> to vector<6x32x16xbf16>
    "tpu.trace_start"() <{level = 10 : i32, message = "hse,hed->hsd"}> : () -> ()
    %cst_21 = arith.constant dense<0.000000e+00> : vector<6x8x16xf32>
    %36 = tpu.matmul %33, %35, %cst_21 {dimension_numbers = #tpu.dot_dimension_numbers<[2], [1], [1], [2], [0, 0, 0, 1, 1, 2], [0], [0]>} : vector<6x8x32xbf16>, vector<6x32x16xbf16>, vector<6x8x16xf32> -> vector<6x8x16xf32>
    "tpu.trace_stop"() : () -> ()
    %c0_22 = arith.constant 0 : index
    %c0_23 = arith.constant 0 : index
    %c0_24 = arith.constant 0 : index
    %c0_25 = arith.constant 0 : index
    %37 = vector.load %arg8[%c0_22, %c0_23, %c0_24, %c0_25] : memref<2x6x1x16xf32, #tpu.memory_space<vmem>>, vector<1x6x1x16xf32>
    %38 = vector.shape_cast %37 : vector<1x6x1x16xf32> to vector<6x1x16xf32>
    %39 = vector.broadcast %38 : vector<6x1x16xf32> to vector<6x8x16xf32>
    %40 = arith.addf %36, %39 : vector<6x8x16xf32>
    %41 = arith.truncf %40 : vector<6x8x16xf32> to vector<6x8x16xbf16>
    %42 = vector.extract_strided_slice %41 {offsets = [0, 0, 0], sizes = [2, 8, 16], strides = [1, 1, 1]} : vector<6x8x16xbf16> to vector<2x8x16xbf16>
    %43 = vector.extract_strided_slice %41 {offsets = [2, 0, 0], sizes = [2, 8, 16], strides = [1, 1, 1]} : vector<6x8x16xbf16> to vector<2x8x16xbf16>
    %44 = vector.extract_strided_slice %41 {offsets = [4, 0, 0], sizes = [2, 8, 16], strides = [1, 1, 1]} : vector<6x8x16xbf16> to vector<2x8x16xbf16>
    "tpu.trace_start"() <{level = 10 : i32, message = "hsd,htd->hst"}> : () -> ()
    %cst_26 = arith.constant dense<0.000000e+00> : vector<2x8x8xf32>
    %45 = tpu.matmul %42, %43, %cst_26 {dimension_numbers = #tpu.dot_dimension_numbers<[2], [2], [1], [1], [0, 0, 0, 1, 1, 1], [0], [0]>} : vector<2x8x16xbf16>, vector<2x8x16xbf16>, vector<2x8x8xf32> -> vector<2x8x8xf32>
    "tpu.trace_stop"() : () -> ()
    %46 = vector.shape_cast %30 : vector<1x8xf32> to vector<1x1x8xf32>
    %47 = vector.broadcast %46 : vector<1x1x8xf32> to vector<2x8x8xf32>
    %48 = arith.addf %45, %47 : vector<2x8x8xf32>
    %cst_27 = arith.constant dense<0xFF800000> : vector<2x8xf32>
    %49 = vector.multi_reduction <maximumf>, %48, %cst_27 [2] : vector<2x8x8xf32> to vector<2x8xf32>
    %50 = vector.shape_cast %49 : vector<2x8xf32> to vector<2x8x1xf32>
    %51 = vector.broadcast %50 : vector<2x8x1xf32> to vector<2x8x8xf32>
    %52 = arith.subf %48, %51 : vector<2x8x8xf32>
    %53 = math.exp %52 : vector<2x8x8xf32>
    %cst_28 = arith.constant dense<0.000000e+00> : vector<2x8xf32>
    %54 = vector.multi_reduction <add>, %53, %cst_28 [2] : vector<2x8x8xf32> to vector<2x8xf32>
    %55 = vector.shape_cast %54 : vector<2x8xf32> to vector<2x8x1xf32>
    %56 = tpu.reciprocal %55 {approx = true} : vector<2x8x1xf32> -> vector<2x8x1xf32>
    %57 = vector.broadcast %56 : vector<2x8x1xf32> to vector<2x8x8xf32>
    %58 = arith.mulf %53, %57 : vector<2x8x8xf32>
    %59 = arith.truncf %58 : vector<2x8x8xf32> to vector<2x8x8xbf16>
    "tpu.trace_start"() <{level = 10 : i32, message = "hst,htd->hsd"}> : () -> ()
    %cst_29 = arith.constant dense<0.000000e+00> : vector<2x8x16xf32>
    %60 = tpu.matmul %59, %44, %cst_29 {dimension_numbers = #tpu.dot_dimension_numbers<[2], [1], [1], [2], [0, 0, 0, 1, 1, 2], [0], [0]>} : vector<2x8x8xbf16>, vector<2x8x16xbf16>, vector<2x8x16xf32> -> vector<2x8x16xf32>
    "tpu.trace_stop"() : () -> ()
    %61 = arith.truncf %60 : vector<2x8x16xf32> to vector<2x8x16xbf16>
    %c0_30 = arith.constant 0 : index
    %c0_31 = arith.constant 0 : index
    %c0_32 = arith.constant 0 : index
    %c0_33 = arith.constant 0 : index
    %62 = vector.load %arg9[%c0_30, %c0_31, %c0_32, %c0_33] : memref<2x2x16x32xbf16, #tpu.memory_space<vmem>>, vector<1x2x16x32xbf16>
    %63 = vector.shape_cast %62 : vector<1x2x16x32xbf16> to vector<2x16x32xbf16>
    "tpu.trace_start"() <{level = 10 : i32, message = "hsd,hde->hse"}> : () -> ()
    %cst_34 = arith.constant dense<0.000000e+00> : vector<2x8x32xf32>
    %64 = tpu.matmul %61, %63, %cst_34 {dimension_numbers = #tpu.dot_dimension_numbers<[2], [1], [1], [2], [0, 0, 0, 1, 1, 2], [0], [0]>} : vector<2x8x16xbf16>, vector<2x16x32xbf16>, vector<2x8x32xf32> -> vector<2x8x32xf32>
    "tpu.trace_stop"() : () -> ()
    %cst_35 = arith.constant dense<0.000000e+00> : vector<8x32xf32>
    %65 = vector.multi_reduction <add>, %64, %cst_35 [0] : vector<2x8x32xf32> to vector<8x32xf32>
    %c0_36 = arith.constant 0 : index
    %c0_37 = arith.constant 0 : index
    %c0_38 = arith.constant 0 : index
    %66 = vector.load %arg10[%c0_36, %c0_37, %c0_38] : memref<2x1x32xf32, #tpu.memory_space<vmem>>, vector<1x1x32xf32>
    %67 = vector.shape_cast %66 : vector<1x1x32xf32> to vector<1x32xf32>
    %68 = vector.broadcast %67 : vector<1x32xf32> to vector<8x32xf32>
    %69 = arith.addf %65, %68 : vector<8x32xf32>
    %70 = arith.addf %69, %28 : vector<8x32xf32>
    %c0_39 = arith.constant 0 : index
    %c0_40 = arith.constant 0 : index
    %c0_41 = arith.constant 0 : index
    %71 = vector.load %arg11[%c0_39, %c0_40, %c0_41] : memref<2x1x32xf32, #tpu.memory_space<vmem>>, vector<1x1x32xf32>
    %72 = vector.shape_cast %71 : vector<1x1x32xf32> to vector<1x32xf32>
    %c0_42 = arith.constant 0 : index
    %c0_43 = arith.constant 0 : index
    %c0_44 = arith.constant 0 : index
    %73 = vector.load %arg12[%c0_42, %c0_43, %c0_44] : memref<2x1x32xf32, #tpu.memory_space<vmem>>, vector<1x1x32xf32>
    %74 = vector.shape_cast %73 : vector<1x1x32xf32> to vector<1x32xf32>
    %cst_45 = arith.constant dense<0.000000e+00> : vector<8xf32>
    %75 = vector.multi_reduction <add>, %70, %cst_45 [1] : vector<8x32xf32> to vector<8xf32>
    %76 = vector.shape_cast %75 : vector<8xf32> to vector<8x1xf32>
    %cst_46 = arith.constant 3.200000e+01 : f32
    %77 = vector.broadcast %cst_46 : f32 to vector<8x1xf32>
    %78 = arith.divf %76, %77 : vector<8x1xf32>
    %79 = vector.broadcast %78 : vector<8x1xf32> to vector<8x32xf32>
    %80 = arith.subf %70, %79 : vector<8x32xf32>
    %81 = arith.mulf %80, %80 : vector<8x32xf32>
    %cst_47 = arith.constant dense<0.000000e+00> : vector<8xf32>
    %82 = vector.multi_reduction <add>, %81, %cst_47 [1] : vector<8x32xf32> to vector<8xf32>
    %83 = vector.shape_cast %82 : vector<8xf32> to vector<8x1xf32>
    %cst_48 = arith.constant 3.200000e+01 : f32
    %84 = vector.broadcast %cst_48 : f32 to vector<8x1xf32>
    %85 = arith.divf %83, %84 : vector<8x1xf32>
    %cst_49 = arith.constant 9.99999996E-13 : f32
    %86 = vector.broadcast %cst_49 : f32 to vector<8x1xf32>
    %87 = arith.addf %85, %86 : vector<8x1xf32>
    %88 = math.rsqrt %87 : vector<8x1xf32>
    %89 = vector.broadcast %88 : vector<8x1xf32> to vector<8x32xf32>
    %90 = arith.mulf %80, %89 : vector<8x32xf32>
    %91 = vector.broadcast %72 : vector<1x32xf32> to vector<8x32xf32>
    %92 = arith.mulf %90, %91 : vector<8x32xf32>
    %93 = vector.broadcast %74 : vector<1x32xf32> to vector<8x32xf32>
    %94 = arith.addf %92, %93 : vector<8x32xf32>
    %95 = arith.truncf %94 : vector<8x32xf32> to vector<8x32xbf16>
    %c0_50 = arith.constant 0 : index
    %c0_51 = arith.constant 0 : index
    %c0_52 = arith.constant 0 : index
    %96 = vector.load %arg13[%c0_50, %c0_51, %c0_52] : memref<2x32x64xbf16, #tpu.memory_space<vmem>>, vector<1x32x64xbf16>
    %97 = vector.shape_cast %96 : vector<1x32x64xbf16> to vector<32x64xbf16>
    %cst_53 = arith.constant dense<0.000000e+00> : vector<8x64xf32>
    %98 = tpu.matmul %95, %97, %cst_53 {dimension_numbers = #tpu.dot_dimension_numbers<[1], [0], [0], [1], [0, 0, 1, 1], [], []>} : vector<8x32xbf16>, vector<32x64xbf16>, vector<8x64xf32> -> vector<8x64xf32>
    %c0_54 = arith.constant 0 : index
    %c0_55 = arith.constant 0 : index
    %c0_56 = arith.constant 0 : index
    %99 = vector.load %arg14[%c0_54, %c0_55, %c0_56] : memref<2x1x64xf32, #tpu.memory_space<vmem>>, vector<1x1x64xf32>
    %100 = vector.shape_cast %99 : vector<1x1x64xf32> to vector<1x64xf32>
    %101 = vector.broadcast %100 : vector<1x64xf32> to vector<8x64xf32>
    %102 = arith.addf %98, %101 : vector<8x64xf32>
    %cst_57 = arith.constant 5.000000e-01 : f32
    %103 = vector.broadcast %cst_57 : f32 to vector<8x64xf32>
    %104 = arith.mulf %103, %102 : vector<8x64xf32>
    %cst_58 = arith.constant 0.707106769 : f32
    %105 = vector.broadcast %cst_58 : f32 to vector<8x64xf32>
    %106 = arith.mulf %102, %105 : vector<8x64xf32>
    %107 = math.absf %106 : vector<8x64xf32>
    %cst_59 = arith.constant 0.327591091 : f32
    %108 = vector.broadcast %cst_59 : f32 to vector<8x64xf32>
    %109 = arith.mulf %108, %107 : vector<8x64xf32>
    %cst_60 = arith.constant 1.000000e+00 : f32
    %110 = vector.broadcast %cst_60 : f32 to vector<8x64xf32>
    %111 = arith.addf %110, %109 : vector<8x64xf32>
    %cst_61 = arith.constant 1.000000e+00 : f32
    %112 = vector.broadcast %cst_61 : f32 to vector<8x64xf32>
    %113 = arith.divf %112, %111 : vector<8x64xf32>
    %cst_62 = arith.constant 1.06140542 : f32
    %114 = vector.broadcast %cst_62 : f32 to vector<8x64xf32>
    %115 = arith.mulf %114, %113 : vector<8x64xf32>
    %cst_63 = arith.constant -1.45315206 : f32
    %116 = vector.broadcast %cst_63 : f32 to vector<8x64xf32>
    %117 = arith.addf %115, %116 : vector<8x64xf32>
    %118 = arith.mulf %117, %113 : vector<8x64xf32>
    %cst_64 = arith.constant 1.42141378 : f32
    %119 = vector.broadcast %cst_64 : f32 to vector<8x64xf32>
    %120 = arith.addf %118, %119 : vector<8x64xf32>
    %121 = arith.mulf %120, %113 : vector<8x64xf32>
    %cst_65 = arith.constant -0.284496725 : f32
    %122 = vector.broadcast %cst_65 : f32 to vector<8x64xf32>
    %123 = arith.addf %121, %122 : vector<8x64xf32>
    %124 = arith.mulf %123, %113 : vector<8x64xf32>
    %cst_66 = arith.constant 0.254829586 : f32
    %125 = vector.broadcast %cst_66 : f32 to vector<8x64xf32>
    %126 = arith.addf %124, %125 : vector<8x64xf32>
    %127 = arith.mulf %126, %113 : vector<8x64xf32>
    %128 = arith.mulf %107, %107 : vector<8x64xf32>
    %cst_67 = arith.constant 0.000000e+00 : f32
    %129 = vector.broadcast %cst_67 : f32 to vector<8x64xf32>
    %130 = arith.subf %129, %128 : vector<8x64xf32>
    %131 = math.exp %130 : vector<8x64xf32>
    %132 = arith.mulf %127, %131 : vector<8x64xf32>
    %cst_68 = arith.constant 1.000000e+00 : f32
    %133 = vector.broadcast %cst_68 : f32 to vector<8x64xf32>
    %134 = arith.subf %133, %132 : vector<8x64xf32>
    %cst_69 = arith.constant 0.000000e+00 : f32
    %135 = vector.broadcast %cst_69 : f32 to vector<8x64xf32>
    %136 = arith.cmpf olt, %106, %135 : vector<8x64xf32>
    %cst_70 = arith.constant 0.000000e+00 : f32
    %137 = vector.broadcast %cst_70 : f32 to vector<8x64xf32>
    %138 = arith.subf %137, %134 : vector<8x64xf32>
    %139 = arith.select %136, %138, %134 : vector<8x64xi1>, vector<8x64xf32>
    %cst_71 = arith.constant 1.000000e+00 : f32
    %140 = vector.broadcast %cst_71 : f32 to vector<8x64xf32>
    %141 = arith.addf %140, %139 : vector<8x64xf32>
    %142 = arith.mulf %104, %141 : vector<8x64xf32>
    %143 = arith.truncf %142 : vector<8x64xf32> to vector<8x64xbf16>
    %c0_72 = arith.constant 0 : index
    %c0_73 = arith.constant 0 : index
    %c0_74 = arith.constant 0 : index
    %144 = vector.load %arg15[%c0_72, %c0_73, %c0_74] : memref<2x64x32xbf16, #tpu.memory_space<vmem>>, vector<1x64x32xbf16>
    %145 = vector.shape_cast %144 : vector<1x64x32xbf16> to vector<64x32xbf16>
    %cst_75 = arith.constant dense<0.000000e+00> : vector<8x32xf32>
    %146 = tpu.matmul %143, %145, %cst_75 {dimension_numbers = #tpu.dot_dimension_numbers<[1], [0], [0], [1], [0, 0, 1, 1], [], []>} : vector<8x64xbf16>, vector<64x32xbf16>, vector<8x32xf32> -> vector<8x32xf32>
    %c0_76 = arith.constant 0 : index
    %c0_77 = arith.constant 0 : index
    %c0_78 = arith.constant 0 : index
    %147 = vector.load %arg16[%c0_76, %c0_77, %c0_78] : memref<2x1x32xf32, #tpu.memory_space<vmem>>, vector<1x1x32xf32>
    %148 = vector.shape_cast %147 : vector<1x1x32xf32> to vector<1x32xf32>
    %149 = vector.broadcast %148 : vector<1x32xf32> to vector<8x32xf32>
    %150 = arith.addf %146, %149 : vector<8x32xf32>
    %151 = arith.addf %150, %94 : vector<8x32xf32>
    %c0_79 = arith.constant 0 : index
    %c0_80 = arith.constant 0 : index
    %c0_81 = arith.constant 0 : index
    %152 = vector.load %arg17[%c0_79, %c0_80, %c0_81] : memref<2x1x32xf32, #tpu.memory_space<vmem>>, vector<1x1x32xf32>
    %153 = vector.shape_cast %152 : vector<1x1x32xf32> to vector<1x32xf32>
    %c0_82 = arith.constant 0 : index
    %c0_83 = arith.constant 0 : index
    %c0_84 = arith.constant 0 : index
    %154 = vector.load %arg18[%c0_82, %c0_83, %c0_84] : memref<2x1x32xf32, #tpu.memory_space<vmem>>, vector<1x1x32xf32>
    %155 = vector.shape_cast %154 : vector<1x1x32xf32> to vector<1x32xf32>
    %cst_85 = arith.constant dense<0.000000e+00> : vector<8xf32>
    %156 = vector.multi_reduction <add>, %151, %cst_85 [1] : vector<8x32xf32> to vector<8xf32>
    %157 = vector.shape_cast %156 : vector<8xf32> to vector<8x1xf32>
    %cst_86 = arith.constant 3.200000e+01 : f32
    %158 = vector.broadcast %cst_86 : f32 to vector<8x1xf32>
    %159 = arith.divf %157, %158 : vector<8x1xf32>
    %160 = vector.broadcast %159 : vector<8x1xf32> to vector<8x32xf32>
    %161 = arith.subf %151, %160 : vector<8x32xf32>
    %162 = arith.mulf %161, %161 : vector<8x32xf32>
    %cst_87 = arith.constant dense<0.000000e+00> : vector<8xf32>
    %163 = vector.multi_reduction <add>, %162, %cst_87 [1] : vector<8x32xf32> to vector<8xf32>
    %164 = vector.shape_cast %163 : vector<8xf32> to vector<8x1xf32>
    %cst_88 = arith.constant 3.200000e+01 : f32
    %165 = vector.broadcast %cst_88 : f32 to vector<8x1xf32>
    %166 = arith.divf %164, %165 : vector<8x1xf32>
    %cst_89 = arith.constant 9.99999996E-13 : f32
    %167 = vector.broadcast %cst_89 : f32 to vector<8x1xf32>
    %168 = arith.addf %166, %167 : vector<8x1xf32>
    %169 = math.rsqrt %168 : vector<8x1xf32>
    %170 = vector.broadcast %169 : vector<8x1xf32> to vector<8x32xf32>
    %171 = arith.mulf %161, %170 : vector<8x32xf32>
    %172 = vector.broadcast %153 : vector<1x32xf32> to vector<8x32xf32>
    %173 = arith.mulf %171, %172 : vector<8x32xf32>
    %174 = vector.broadcast %155 : vector<1x32xf32> to vector<8x32xf32>
    %175 = arith.addf %173, %174 : vector<8x32xf32>
    %176 = arith.truncf %175 : vector<8x32xf32> to vector<8x32xbf16>
    %177 = vector.shape_cast %176 : vector<8x32xbf16> to vector<1x8x32xbf16>
    %178 = vector.broadcast %177 : vector<1x8x32xbf16> to vector<6x8x32xbf16>
    %c1 = arith.constant 1 : index
    %c0_90 = arith.constant 0 : index
    %c0_91 = arith.constant 0 : index
    %c0_92 = arith.constant 0 : index
    %179 = vector.load %arg7[%c1, %c0_90, %c0_91, %c0_92] : memref<2x6x32x16xbf16, #tpu.memory_space<vmem>>, vector<1x6x32x16xbf16>
    %180 = vector.shape_cast %179 : vector<1x6x32x16xbf16> to vector<6x32x16xbf16>
    "tpu.trace_start"() <{level = 10 : i32, message = "hse,hed->hsd"}> : () -> ()
    %cst_93 = arith.constant dense<0.000000e+00> : vector<6x8x16xf32>
    %181 = tpu.matmul %178, %180, %cst_93 {dimension_numbers = #tpu.dot_dimension_numbers<[2], [1], [1], [2], [0, 0, 0, 1, 1, 2], [0], [0]>} : vector<6x8x32xbf16>, vector<6x32x16xbf16>, vector<6x8x16xf32> -> vector<6x8x16xf32>
    "tpu.trace_stop"() : () -> ()
    %c1_94 = arith.constant 1 : index
    %c0_95 = arith.constant 0 : index
    %c0_96 = arith.constant 0 : index
    %c0_97 = arith.constant 0 : index
    %182 = vector.load %arg8[%c1_94, %c0_95, %c0_96, %c0_97] : memref<2x6x1x16xf32, #tpu.memory_space<vmem>>, vector<1x6x1x16xf32>
    %183 = vector.shape_cast %182 : vector<1x6x1x16xf32> to vector<6x1x16xf32>
    %184 = vector.broadcast %183 : vector<6x1x16xf32> to vector<6x8x16xf32>
    %185 = arith.addf %181, %184 : vector<6x8x16xf32>
    %186 = arith.truncf %185 : vector<6x8x16xf32> to vector<6x8x16xbf16>
    %187 = vector.extract_strided_slice %186 {offsets = [0, 0, 0], sizes = [2, 8, 16], strides = [1, 1, 1]} : vector<6x8x16xbf16> to vector<2x8x16xbf16>
    %188 = vector.extract_strided_slice %186 {offsets = [2, 0, 0], sizes = [2, 8, 16], strides = [1, 1, 1]} : vector<6x8x16xbf16> to vector<2x8x16xbf16>
    %189 = vector.extract_strided_slice %186 {offsets = [4, 0, 0], sizes = [2, 8, 16], strides = [1, 1, 1]} : vector<6x8x16xbf16> to vector<2x8x16xbf16>
    "tpu.trace_start"() <{level = 10 : i32, message = "hsd,htd->hst"}> : () -> ()
    %cst_98 = arith.constant dense<0.000000e+00> : vector<2x8x8xf32>
    %190 = tpu.matmul %187, %188, %cst_98 {dimension_numbers = #tpu.dot_dimension_numbers<[2], [2], [1], [1], [0, 0, 0, 1, 1, 1], [0], [0]>} : vector<2x8x16xbf16>, vector<2x8x16xbf16>, vector<2x8x8xf32> -> vector<2x8x8xf32>
    "tpu.trace_stop"() : () -> ()
    %191 = vector.shape_cast %30 : vector<1x8xf32> to vector<1x1x8xf32>
    %192 = vector.broadcast %191 : vector<1x1x8xf32> to vector<2x8x8xf32>
    %193 = arith.addf %190, %192 : vector<2x8x8xf32>
    %cst_99 = arith.constant dense<0xFF800000> : vector<2x8xf32>
    %194 = vector.multi_reduction <maximumf>, %193, %cst_99 [2] : vector<2x8x8xf32> to vector<2x8xf32>
    %195 = vector.shape_cast %194 : vector<2x8xf32> to vector<2x8x1xf32>
    %196 = vector.broadcast %195 : vector<2x8x1xf32> to vector<2x8x8xf32>
    %197 = arith.subf %193, %196 : vector<2x8x8xf32>
    %198 = math.exp %197 : vector<2x8x8xf32>
    %cst_100 = arith.constant dense<0.000000e+00> : vector<2x8xf32>
    %199 = vector.multi_reduction <add>, %198, %cst_100 [2] : vector<2x8x8xf32> to vector<2x8xf32>
    %200 = vector.shape_cast %199 : vector<2x8xf32> to vector<2x8x1xf32>
    %201 = tpu.reciprocal %200 {approx = true} : vector<2x8x1xf32> -> vector<2x8x1xf32>
    %202 = vector.broadcast %201 : vector<2x8x1xf32> to vector<2x8x8xf32>
    %203 = arith.mulf %198, %202 : vector<2x8x8xf32>
    %204 = arith.truncf %203 : vector<2x8x8xf32> to vector<2x8x8xbf16>
    "tpu.trace_start"() <{level = 10 : i32, message = "hst,htd->hsd"}> : () -> ()
    %cst_101 = arith.constant dense<0.000000e+00> : vector<2x8x16xf32>
    %205 = tpu.matmul %204, %189, %cst_101 {dimension_numbers = #tpu.dot_dimension_numbers<[2], [1], [1], [2], [0, 0, 0, 1, 1, 2], [0], [0]>} : vector<2x8x8xbf16>, vector<2x8x16xbf16>, vector<2x8x16xf32> -> vector<2x8x16xf32>
    "tpu.trace_stop"() : () -> ()
    %206 = arith.truncf %205 : vector<2x8x16xf32> to vector<2x8x16xbf16>
    %c1_102 = arith.constant 1 : index
    %c0_103 = arith.constant 0 : index
    %c0_104 = arith.constant 0 : index
    %c0_105 = arith.constant 0 : index
    %207 = vector.load %arg9[%c1_102, %c0_103, %c0_104, %c0_105] : memref<2x2x16x32xbf16, #tpu.memory_space<vmem>>, vector<1x2x16x32xbf16>
    %208 = vector.shape_cast %207 : vector<1x2x16x32xbf16> to vector<2x16x32xbf16>
    "tpu.trace_start"() <{level = 10 : i32, message = "hsd,hde->hse"}> : () -> ()
    %cst_106 = arith.constant dense<0.000000e+00> : vector<2x8x32xf32>
    %209 = tpu.matmul %206, %208, %cst_106 {dimension_numbers = #tpu.dot_dimension_numbers<[2], [1], [1], [2], [0, 0, 0, 1, 1, 2], [0], [0]>} : vector<2x8x16xbf16>, vector<2x16x32xbf16>, vector<2x8x32xf32> -> vector<2x8x32xf32>
    "tpu.trace_stop"() : () -> ()
    %cst_107 = arith.constant dense<0.000000e+00> : vector<8x32xf32>
    %210 = vector.multi_reduction <add>, %209, %cst_107 [0] : vector<2x8x32xf32> to vector<8x32xf32>
    %c1_108 = arith.constant 1 : index
    %c0_109 = arith.constant 0 : index
    %c0_110 = arith.constant 0 : index
    %211 = vector.load %arg10[%c1_108, %c0_109, %c0_110] : memref<2x1x32xf32, #tpu.memory_space<vmem>>, vector<1x1x32xf32>
    %212 = vector.shape_cast %211 : vector<1x1x32xf32> to vector<1x32xf32>
    %213 = vector.broadcast %212 : vector<1x32xf32> to vector<8x32xf32>
    %214 = arith.addf %210, %213 : vector<8x32xf32>
    %215 = arith.addf %214, %175 : vector<8x32xf32>
    %c1_111 = arith.constant 1 : index
    %c0_112 = arith.constant 0 : index
    %c0_113 = arith.constant 0 : index
    %216 = vector.load %arg11[%c1_111, %c0_112, %c0_113] : memref<2x1x32xf32, #tpu.memory_space<vmem>>, vector<1x1x32xf32>
    %217 = vector.shape_cast %216 : vector<1x1x32xf32> to vector<1x32xf32>
    %c1_114 = arith.constant 1 : index
    %c0_115 = arith.constant 0 : index
    %c0_116 = arith.constant 0 : index
    %218 = vector.load %arg12[%c1_114, %c0_115, %c0_116] : memref<2x1x32xf32, #tpu.memory_space<vmem>>, vector<1x1x32xf32>
    %219 = vector.shape_cast %218 : vector<1x1x32xf32> to vector<1x32xf32>
    %cst_117 = arith.constant dense<0.000000e+00> : vector<8xf32>
    %220 = vector.multi_reduction <add>, %215, %cst_117 [1] : vector<8x32xf32> to vector<8xf32>
    %221 = vector.shape_cast %220 : vector<8xf32> to vector<8x1xf32>
    %cst_118 = arith.constant 3.200000e+01 : f32
    %222 = vector.broadcast %cst_118 : f32 to vector<8x1xf32>
    %223 = arith.divf %221, %222 : vector<8x1xf32>
    %224 = vector.broadcast %223 : vector<8x1xf32> to vector<8x32xf32>
    %225 = arith.subf %215, %224 : vector<8x32xf32>
    %226 = arith.mulf %225, %225 : vector<8x32xf32>
    %cst_119 = arith.constant dense<0.000000e+00> : vector<8xf32>
    %227 = vector.multi_reduction <add>, %226, %cst_119 [1] : vector<8x32xf32> to vector<8xf32>
    %228 = vector.shape_cast %227 : vector<8xf32> to vector<8x1xf32>
    %cst_120 = arith.constant 3.200000e+01 : f32
    %229 = vector.broadcast %cst_120 : f32 to vector<8x1xf32>
    %230 = arith.divf %228, %229 : vector<8x1xf32>
    %cst_121 = arith.constant 9.99999996E-13 : f32
    %231 = vector.broadcast %cst_121 : f32 to vector<8x1xf32>
    %232 = arith.addf %230, %231 : vector<8x1xf32>
    %233 = math.rsqrt %232 : vector<8x1xf32>
    %234 = vector.broadcast %233 : vector<8x1xf32> to vector<8x32xf32>
    %235 = arith.mulf %225, %234 : vector<8x32xf32>
    %236 = vector.broadcast %217 : vector<1x32xf32> to vector<8x32xf32>
    %237 = arith.mulf %235, %236 : vector<8x32xf32>
    %238 = vector.broadcast %219 : vector<1x32xf32> to vector<8x32xf32>
    %239 = arith.addf %237, %238 : vector<8x32xf32>
    %240 = arith.truncf %239 : vector<8x32xf32> to vector<8x32xbf16>
    %c1_122 = arith.constant 1 : index
    %c0_123 = arith.constant 0 : index
    %c0_124 = arith.constant 0 : index
    %241 = vector.load %arg13[%c1_122, %c0_123, %c0_124] : memref<2x32x64xbf16, #tpu.memory_space<vmem>>, vector<1x32x64xbf16>
    %242 = vector.shape_cast %241 : vector<1x32x64xbf16> to vector<32x64xbf16>
    %cst_125 = arith.constant dense<0.000000e+00> : vector<8x64xf32>
    %243 = tpu.matmul %240, %242, %cst_125 {dimension_numbers = #tpu.dot_dimension_numbers<[1], [0], [0], [1], [0, 0, 1, 1], [], []>} : vector<8x32xbf16>, vector<32x64xbf16>, vector<8x64xf32> -> vector<8x64xf32>
    %c1_126 = arith.constant 1 : index
    %c0_127 = arith.constant 0 : index
    %c0_128 = arith.constant 0 : index
    %244 = vector.load %arg14[%c1_126, %c0_127, %c0_128] : memref<2x1x64xf32, #tpu.memory_space<vmem>>, vector<1x1x64xf32>
    %245 = vector.shape_cast %244 : vector<1x1x64xf32> to vector<1x64xf32>
    %246 = vector.broadcast %245 : vector<1x64xf32> to vector<8x64xf32>
    %247 = arith.addf %243, %246 : vector<8x64xf32>
    %cst_129 = arith.constant 5.000000e-01 : f32
    %248 = vector.broadcast %cst_129 : f32 to vector<8x64xf32>
    %249 = arith.mulf %248, %247 : vector<8x64xf32>
    %cst_130 = arith.constant 0.707106769 : f32
    %250 = vector.broadcast %cst_130 : f32 to vector<8x64xf32>
    %251 = arith.mulf %247, %250 : vector<8x64xf32>
    %252 = math.absf %251 : vector<8x64xf32>
    %cst_131 = arith.constant 0.327591091 : f32
    %253 = vector.broadcast %cst_131 : f32 to vector<8x64xf32>
    %254 = arith.mulf %253, %252 : vector<8x64xf32>
    %cst_132 = arith.constant 1.000000e+00 : f32
    %255 = vector.broadcast %cst_132 : f32 to vector<8x64xf32>
    %256 = arith.addf %255, %254 : vector<8x64xf32>
    %cst_133 = arith.constant 1.000000e+00 : f32
    %257 = vector.broadcast %cst_133 : f32 to vector<8x64xf32>
    %258 = arith.divf %257, %256 : vector<8x64xf32>
    %cst_134 = arith.constant 1.06140542 : f32
    %259 = vector.broadcast %cst_134 : f32 to vector<8x64xf32>
    %260 = arith.mulf %259, %258 : vector<8x64xf32>
    %cst_135 = arith.constant -1.45315206 : f32
    %261 = vector.broadcast %cst_135 : f32 to vector<8x64xf32>
    %262 = arith.addf %260, %261 : vector<8x64xf32>
    %263 = arith.mulf %262, %258 : vector<8x64xf32>
    %cst_136 = arith.constant 1.42141378 : f32
    %264 = vector.broadcast %cst_136 : f32 to vector<8x64xf32>
    %265 = arith.addf %263, %264 : vector<8x64xf32>
    %266 = arith.mulf %265, %258 : vector<8x64xf32>
    %cst_137 = arith.constant -0.284496725 : f32
    %267 = vector.broadcast %cst_137 : f32 to vector<8x64xf32>
    %268 = arith.addf %266, %267 : vector<8x64xf32>
    %269 = arith.mulf %268, %258 : vector<8x64xf32>
    %cst_138 = arith.constant 0.254829586 : f32
    %270 = vector.broadcast %cst_138 : f32 to vector<8x64xf32>
    %271 = arith.addf %269, %270 : vector<8x64xf32>
    %272 = arith.mulf %271, %258 : vector<8x64xf32>
    %273 = arith.mulf %252, %252 : vector<8x64xf32>
    %cst_139 = arith.constant 0.000000e+00 : f32
    %274 = vector.broadcast %cst_139 : f32 to vector<8x64xf32>
    %275 = arith.subf %274, %273 : vector<8x64xf32>
    %276 = math.exp %275 : vector<8x64xf32>
    %277 = arith.mulf %272, %276 : vector<8x64xf32>
    %cst_140 = arith.constant 1.000000e+00 : f32
    %278 = vector.broadcast %cst_140 : f32 to vector<8x64xf32>
    %279 = arith.subf %278, %277 : vector<8x64xf32>
    %cst_141 = arith.constant 0.000000e+00 : f32
    %280 = vector.broadcast %cst_141 : f32 to vector<8x64xf32>
    %281 = arith.cmpf olt, %251, %280 : vector<8x64xf32>
    %cst_142 = arith.constant 0.000000e+00 : f32
    %282 = vector.broadcast %cst_142 : f32 to vector<8x64xf32>
    %283 = arith.subf %282, %279 : vector<8x64xf32>
    %284 = arith.select %281, %283, %279 : vector<8x64xi1>, vector<8x64xf32>
    %cst_143 = arith.constant 1.000000e+00 : f32
    %285 = vector.broadcast %cst_143 : f32 to vector<8x64xf32>
    %286 = arith.addf %285, %284 : vector<8x64xf32>
    %287 = arith.mulf %249, %286 : vector<8x64xf32>
    %288 = arith.truncf %287 : vector<8x64xf32> to vector<8x64xbf16>
    %c1_144 = arith.constant 1 : index
    %c0_145 = arith.constant 0 : index
    %c0_146 = arith.constant 0 : index
    %289 = vector.load %arg15[%c1_144, %c0_145, %c0_146] : memref<2x64x32xbf16, #tpu.memory_space<vmem>>, vector<1x64x32xbf16>
    %290 = vector.shape_cast %289 : vector<1x64x32xbf16> to vector<64x32xbf16>
    %cst_147 = arith.constant dense<0.000000e+00> : vector<8x32xf32>
    %291 = tpu.matmul %288, %290, %cst_147 {dimension_numbers = #tpu.dot_dimension_numbers<[1], [0], [0], [1], [0, 0, 1, 1], [], []>} : vector<8x64xbf16>, vector<64x32xbf16>, vector<8x32xf32> -> vector<8x32xf32>
    %c1_148 = arith.constant 1 : index
    %c0_149 = arith.constant 0 : index
    %c0_150 = arith.constant 0 : index
    %292 = vector.load %arg16[%c1_148, %c0_149, %c0_150] : memref<2x1x32xf32, #tpu.memory_space<vmem>>, vector<1x1x32xf32>
    %293 = vector.shape_cast %292 : vector<1x1x32xf32> to vector<1x32xf32>
    %294 = vector.broadcast %293 : vector<1x32xf32> to vector<8x32xf32>
    %295 = arith.addf %291, %294 : vector<8x32xf32>
    %296 = arith.addf %295, %239 : vector<8x32xf32>
    %c1_151 = arith.constant 1 : index
    %c0_152 = arith.constant 0 : index
    %c0_153 = arith.constant 0 : index
    %297 = vector.load %arg17[%c1_151, %c0_152, %c0_153] : memref<2x1x32xf32, #tpu.memory_space<vmem>>, vector<1x1x32xf32>
    %298 = vector.shape_cast %297 : vector<1x1x32xf32> to vector<1x32xf32>
    %c1_154 = arith.constant 1 : index
    %c0_155 = arith.constant 0 : index
    %c0_156 = arith.constant 0 : index
    %299 = vector.load %arg18[%c1_154, %c0_155, %c0_156] : memref<2x1x32xf32, #tpu.memory_space<vmem>>, vector<1x1x32xf32>
    %300 = vector.shape_cast %299 : vector<1x1x32xf32> to vector<1x32xf32>
    %cst_157 = arith.constant dense<0.000000e+00> : vector<8xf32>
    %301 = vector.multi_reduction <add>, %296, %cst_157 [1] : vector<8x32xf32> to vector<8xf32>
    %302 = vector.shape_cast %301 : vector<8xf32> to vector<8x1xf32>
    %cst_158 = arith.constant 3.200000e+01 : f32
    %303 = vector.broadcast %cst_158 : f32 to vector<8x1xf32>
    %304 = arith.divf %302, %303 : vector<8x1xf32>
    %305 = vector.broadcast %304 : vector<8x1xf32> to vector<8x32xf32>
    %306 = arith.subf %296, %305 : vector<8x32xf32>
    %307 = arith.mulf %306, %306 : vector<8x32xf32>
    %cst_159 = arith.constant dense<0.000000e+00> : vector<8xf32>
    %308 = vector.multi_reduction <add>, %307, %cst_159 [1] : vector<8x32xf32> to vector<8xf32>
    %309 = vector.shape_cast %308 : vector<8xf32> to vector<8x1xf32>
    %cst_160 = arith.constant 3.200000e+01 : f32
    %310 = vector.broadcast %cst_160 : f32 to vector<8x1xf32>
    %311 = arith.divf %309, %310 : vector<8x1xf32>
    %cst_161 = arith.constant 9.99999996E-13 : f32
    %312 = vector.broadcast %cst_161 : f32 to vector<8x1xf32>
    %313 = arith.addf %311, %312 : vector<8x1xf32>
    %314 = math.rsqrt %313 : vector<8x1xf32>
    %315 = vector.broadcast %314 : vector<8x1xf32> to vector<8x32xf32>
    %316 = arith.mulf %306, %315 : vector<8x32xf32>
    %317 = vector.broadcast %298 : vector<1x32xf32> to vector<8x32xf32>
    %318 = arith.mulf %316, %317 : vector<8x32xf32>
    %319 = vector.broadcast %300 : vector<1x32xf32> to vector<8x32xf32>
    %320 = arith.addf %318, %319 : vector<8x32xf32>
    %321 = arith.truncf %320 : vector<8x32xf32> to vector<8x32xbf16>
    %c0_162 = arith.constant 0 : index
    %c0_163 = arith.constant 0 : index
    %322 = vector.load %arg19[%c0_162, %c0_163] : memref<32x32xbf16, #tpu.memory_space<vmem>>, vector<32x32xbf16>
    %cst_164 = arith.constant dense<0.000000e+00> : vector<8x32xf32>
    %323 = tpu.matmul %321, %322, %cst_164 {dimension_numbers = #tpu.dot_dimension_numbers<[1], [0], [0], [1], [0, 0, 1, 1], [], []>} : vector<8x32xbf16>, vector<32x32xbf16>, vector<8x32xf32> -> vector<8x32xf32>
    %c0_165 = arith.constant 0 : index
    %c0_166 = arith.constant 0 : index
    %324 = vector.load %arg20[%c0_165, %c0_166] : memref<1x32xf32, #tpu.memory_space<vmem>>, vector<1x32xf32>
    %325 = vector.broadcast %324 : vector<1x32xf32> to vector<8x32xf32>
    %326 = arith.addf %323, %325 : vector<8x32xf32>
    %cst_167 = arith.constant 0.000000e+00 : f32
    %327 = vector.broadcast %cst_167 : f32 to vector<8x32xf32>
    %328 = arith.maximumf %326, %327 : vector<8x32xf32>
    %c0_168 = arith.constant 0 : index
    %c0_169 = arith.constant 0 : index
    %c0_170 = arith.constant 0 : index
    %329 = vector.load %arg21[%c0_168, %c0_169, %c0_170] : memref<1x8x32xf32, #tpu.memory_space<vmem>>, vector<1x8x32xf32>
    %330 = vector.shape_cast %329 : vector<1x8x32xf32> to vector<8x32xf32>
    %331 = vector.shape_cast %328 : vector<8x32xf32> to vector<1x8x32xf32>
    tpu.vector_store %arg21[%c0_168, %c0_169, %c0_170], %331 {strides = array<i32>} : memref<1x8x32xf32, #tpu.memory_space<vmem>>, vector<1x8x32xf32>,
    return
  }
  func.func @transform_0(%arg0: i32) -> (i32, i32, i32) {
    %c0_i32 = arith.constant 0 : i32
    %c0_i32_0 = arith.constant 0 : i32
    %c0_i32_1 = arith.constant 0 : i32
    return %arg0, %c0_i32, %c0_i32_0 : i32, i32, i32
  }
  func.func @transform_1(%arg0: i32) -> (i32, i32, i32) {
    %c0_i32 = arith.constant 0 : i32
    %c0_i32_0 = arith.constant 0 : i32
    %c0_i32_1 = arith.constant 0 : i32
    return %arg0, %c0_i32, %c0_i32_0 : i32, i32, i32
  }
  func.func @transform_2(%arg0: i32) -> (i32, i32) {
    %c0_i32 = arith.constant 0 : i32
    %c0_i32_0 = arith.constant 0 : i32
    %c0_i32_1 = arith.constant 0 : i32
    return %c0_i32, %c0_i32_0 : i32, i32
  }
  func.func @transform_3(%arg0: i32) -> (i32, i32) {
    %c0_i32 = arith.constant 0 : i32
    %c0_i32_0 = arith.constant 0 : i32
    %c0_i32_1 = arith.constant 0 : i32
    return %c0_i32, %c0_i32_0 : i32, i32
  }
  func.func @transform_4(%arg0: i32) -> (i32, i32) {
    %c0_i32 = arith.constant 0 : i32
    %c0_i32_0 = arith.constant 0 : i32
    %c0_i32_1 = arith.constant 0 : i32
    return %c0_i32, %c0_i32_0 : i32, i32
  }
  func.func @transform_5(%arg0: i32) -> (i32, i32) {
    %c0_i32 = arith.constant 0 : i32
    %c0_i32_0 = arith.constant 0 : i32
    %c0_i32_1 = arith.constant 0 : i32
    return %c0_i32, %c0_i32_0 : i32, i32
  }
  func.func @transform_6(%arg0: i32) -> (i32, i32, i32, i32) {
    %c0_i32 = arith.constant 0 : i32
    %c0_i32_0 = arith.constant 0 : i32
    %c0_i32_1 = arith.constant 0 : i32
    %c0_i32_2 = arith.constant 0 : i32
    %c0_i32_3 = arith.constant 0 : i32
    return %c0_i32, %c0_i32_0, %c0_i32_1, %c0_i32_2 : i32, i32, i32, i32
  }
  func.func @transform_7(%arg0: i32) -> (i32, i32, i32, i32) {
    %c0_i32 = arith.constant 0 : i32
    %c0_i32_0 = arith.constant 0 : i32
    %c0_i32_1 = arith.constant 0 : i32
    %c0_i32_2 = arith.constant 0 : i32
    %c0_i32_3 = arith.constant 0 : i32
    return %c0_i32, %c0_i32_0, %c0_i32_1, %c0_i32_2 : i32, i32, i32, i32
  }
  func.func @transform_8(%arg0: i32) -> (i32, i32, i32, i32) {
    %c0_i32 = arith.constant 0 : i32
    %c0_i32_0 = arith.constant 0 : i32
    %c0_i32_1 = arith.constant 0 : i32
    %c0_i32_2 = arith.constant 0 : i32
    %c0_i32_3 = arith.constant 0 : i32
    return %c0_i32, %c0_i32_0, %c0_i32_1, %c0_i32_2 : i32, i32, i32, i32
  }
  func.func @transform_9(%arg0: i32) -> (i32, i32, i32) {
    %c0_i32 = arith.constant 0 : i32
    %c0_i32_0 = arith.constant 0 : i32
    %c0_i32_1 = arith.constant 0 : i32
    %c0_i32_2 = arith.constant 0 : i32
    return %c0_i32, %c0_i32_0, %c0_i32_1 : i32, i32, i32
  }
  func.func @transform_10(%arg0: i32) -> (i32, i32, i32) {
    %c0_i32 = arith.constant 0 : i32
    %c0_i32_0 = arith.constant 0 : i32
    %c0_i32_1 = arith.constant 0 : i32
    %c0_i32_2 = arith.constant 0 : i32
    return %c0_i32, %c0_i32_0, %c0_i32_1 : i32, i32, i32
  }
  func.func @transform_11(%arg0: i32) -> (i32, i32, i32) {
    %c0_i32 = arith.constant 0 : i32
    %c0_i32_0 = arith.constant 0 : i32
    %c0_i32_1 = arith.constant 0 : i32
    %c0_i32_2 = arith.constant 0 : i32
    return %c0_i32, %c0_i32_0, %c0_i32_1 : i32, i32, i32
  }
  func.func @transform_12(%arg0: i32) -> (i32, i32, i32) {
    %c0_i32 = arith.constant 0 : i32
    %c0_i32_0 = arith.constant 0 : i32
    %c0_i32_1 = arith.constant 0 : i32
    %c0_i32_2 = arith.constant 0 : i32
    return %c0_i32, %c0_i32_0, %c0_i32_1 : i32, i32, i32
  }
  func.func @transform_13(%arg0: i32) -> (i32, i32, i32) {
    %c0_i32 = arith.constant 0 : i32
    %c0_i32_0 = arith.constant 0 : i32
    %c0_i32_1 = arith.constant 0 : i32
    %c0_i32_2 = arith.constant 0 : i32
    return %c0_i32, %c0_i32_0, %c0_i32_1 : i32, i32, i32
  }
  func.func @transform_14(%arg0: i32) -> (i32, i32, i32) {
    %c0_i32 = arith.constant 0 : i32
    %c0_i32_0 = arith.constant 0 : i32
    %c0_i32_1 = arith.constant 0 : i32
    %c0_i32_2 = arith.constant 0 : i32
    return %c0_i32, %c0_i32_0, %c0_i32_1 : i32, i32, i32
  }
  func.func @transform_15(%arg0: i32) -> (i32, i32, i32) {
    %c0_i32 = arith.constant 0 : i32
    %c0_i32_0 = arith.constant 0 : i32
    %c0_i32_1 = arith.constant 0 : i32
    %c0_i32_2 = arith.constant 0 : i32
    return %c0_i32, %c0_i32_0, %c0_i32_1 : i32, i32, i32
  }
  func.func @transform_16(%arg0: i32) -> (i32, i32, i32) {
    %c0_i32 = arith.constant 0 : i32
    %c0_i32_0 = arith.constant 0 : i32
    %c0_i32_1 = arith.constant 0 : i32
    %c0_i32_2 = arith.constant 0 : i32
    return %c0_i32, %c0_i32_0, %c0_i32_1 : i32, i32, i32
  }
  func.func @transform_17(%arg0: i32) -> (i32, i32, i32) {
    %c0_i32 = arith.constant 0 : i32
    %c0_i32_0 = arith.constant 0 : i32
    %c0_i32_1 = arith.constant 0 : i32
    %c0_i32_2 = arith.constant 0 : i32
    return %c0_i32, %c0_i32_0, %c0_i32_1 : i32, i32, i32
  }
  func.func @transform_18(%arg0: i32) -> (i32, i32) {
    %c0_i32 = arith.constant 0 : i32
    %c0_i32_0 = arith.constant 0 : i32
    %c0_i32_1 = arith.constant 0 : i32
    return %c0_i32, %c0_i32_0 : i32, i32
  }
  func.func @transform_19(%arg0: i32) -> (i32, i32) {
    %c0_i32 = arith.constant 0 : i32
    %c0_i32_0 = arith.constant 0 : i32
    %c0_i32_1 = arith.constant 0 : i32
    return %c0_i32, %c0_i32_0 : i32, i32
  }
  func.func @transform_20(%arg0: i32) -> (i32, i32, i32) {
    %c0_i32 = arith.constant 0 : i32
    %c0_i32_0 = arith.constant 0 : i32
    %c0_i32_1 = arith.constant 0 : i32
    return %arg0, %c0_i32, %c0_i32_0 : i32, i32, i32
  }
}

</mosaic_0001>

<bundles_post_ra>
// kernel: bert_sequence_model_forward.1
= control target key start
LH: loop header
LB: loop body
LE: loop exit
PB: predicated region body
PF: predicated region fallthrough
CT: control target
= control target key end

     0   :  { %s4203_s0 = inlined_call_operand.vmem [shape: f32[2,8,32], index: 0, kind: input, shape index: {}]   ;;  %s4204_s1 = inlined_call_operand.vmem [shape: f32[2,1,8], index: 1, kind: input, shape index: {}]   ;;  %s4205_s2 = inlined_call_operand.hbm [shape: f32[8,32], index: 2, kind: input, shape index: {}]   ;;  %s4206_s3 = inlined_call_operand.vmem [shape: f32[1,32], index: 3, kind: input, shape index: {}]   ;;  %s4207_s4 = inlined_call_operand.vmem [shape: f32[1,32], index: 4, kind: input, shape index: {}]   ;;  %s4208_s5 = inlined_call_operand.vmem [shape: f32[1,32], index: 5, kind: input, shape index: {}, may-alias: {5,19}]   ;;  %s4209_s6 = inlined_call_operand.vmem [shape: bf16[2,6,32,16], index: 6, kind: input, shape index: {}]   ;;  %s4210_s7 = inlined_call_operand.vmem [shape: f32[2,6,1,16], index: 7, kind: input, shape index: {}]   ;;  %s4211_s8 = inlined_call_operand.hbm [shape: bf16[2,2,16,32], index: 8, kind: input, shape index: {}]   ;;  %s4212_s9 = inlined_call_operand.vmem [shape: f32[2,1,32], index: 9, kind: input, shape index: {}, may-alias: {9,11,15,17}]   ;;  %s4213_s10 = inlined_call_operand.vmem [shape: f32[2,1,32], index: 10, kind: input, shape index: {}, may-alias: {10,16}]   ;;  %s4214_s11 = inlined_call_operand.vmem [shape: f32[2,1,32], index: 11, kind: input, shape index: {}, may-alias: {9,11,15,17}]   ;;  %s4215_s12 = inlined_call_operand.hbm [shape: bf16[2,32,64], index: 12, kind: input, shape index: {}]   ;;  %s4216_s13 = inlined_call_operand.vmem [shape: f32[2,1,64], index: 13, kind: input, shape index: {}]   ;;  %s4217_s14 = inlined_call_operand.vmem [shape: bf16[2,64,32], index: 14, kind: input, shape index: {}]   ;;  %s4218_s15 = inlined_call_operand.vmem [shape: f32[2,1,32], index: 15, kind: input, shape index: {}, may-alias: {9,11,15,17}]   ;;  %s4219_s16 = inlined_call_operand.vmem [shape: f32[2,1,32], index: 16, kind: input, shape index: {}, may-alias: {10,16}]   ;;  %s4220_s17 = inlined_call_operand.vmem [shape: f32[2,1,32], index: 17, kind: input, shape index: {}, may-alias: {9,11,15,17}]   ;;  %s4221_s18 = inlined_call_operand.hbm [shape: bf16[32,32], index: 18, kind: input, shape index: {}]   ;;  %s4222_s19 = inlined_call_operand.vmem [shape: f32[1,32], index: 19, kind: input, shape index: {}, may-alias: {5,19}]   ;;  %s4223_s20 = inlined_call_operand.vmem [shape: f32[2,8,32], index: 20, kind: output, shape index: {}]  }
   0x1   :  { %4231 = sst [smem:[#allocation13_spill]] %s4203_s0 }
   0x2   :  { %4232 = sst [smem:[#allocation14_spill]] %s4204_s1 }
   0x3   :  { %4233 = sst [smem:[#allocation15_spill]] %s4205_s2 }
   0x4   :  { %4234 = sst [smem:[#allocation16_spill]] %s4206_s3 }
   0x5   :  { %4235 = sst [smem:[#allocation17_spill]] %s4207_s4 }
   0x6   :  { %4236 = sst [smem:[#allocation18_spill]] %s4218_s15 }
   0x7   :  { %4237 = sst [smem:[#allocation19_spill]] %s4219_s16 }
   0x8   :  { %4238 = sst [smem:[#allocation20_spill]] %s4220_s17 }
   0x9   :  { %4239 = sst [smem:[#allocation21_spill]] %s4222_s19 }
   0xa   :  { %4240 = sst [smem:[#allocation22_spill]] %s4223_s20 }
   0xb   :  { %25 = vsyncpa [#allocation3], 0 }
   0xc   :  { %26 = vsyncpa [#allocation5], 0 }
   0xd   :  { %27 = vsyncpa [#allocation8], 0  ;;  %s3663_s1 = smov 0  }
   0xe LB: > { %4241 = sst [smem:[#allocation12_spill]] %s3548_s1  ;;  %s3550_s22 = smov [#allocation4]   ;;  %s3548_s1 = sphi %s3663_s1, %s33_s1  }
   0xf   : > { %s532_s23 = sshll.u32 %s3550_s22, 4  ;;  %s3669_s24 = sadd.s32 4294967295, %s3548_s1   ;;  %s3674_s23 = int_to_ptr.vmem [resolvable:$true] %s532_s23 }
  0x10   : > { %p2832_p0 = scmp.ge.s32.totalorder %s3548_s1, 1  ;;  %p494_p1 = scmp.lt.s32.totalorder %s3548_s1, 3 }
  0x11   : > { %p4229_p2 = scmp.eq.s32.totalorder %s3669_s24, 0  ;;  %s3551_s25 = smov [#allocation2]  }
  0x12   : > { %p3676_p3 = pnand %p2832_p0, %p494_p1  ;;  %s507_s3 = sshll.u32 %s3551_s25, 4  ;;  %s3682_s3 = int_to_ptr.vmem [resolvable:$true] %s507_s3 }
  0x13   : > { %s3552_s27 = smov [#allocation6]   ;;  %s3553_s4 = smov [#allocation7]  }
  0x14   : > { %s4242_s2 = scalar_select %p3676_p3, 1, 0 }
  0x15   : > { %p3305_p4 = pneg %p3676_p3  ;;  %s554_s28 = sshll.u32 %s3552_s27, 4  ;;  %s3690_s28 = int_to_ptr.vmem [resolvable:$true] %s554_s28 }
  0x16   : > { %s3692_s29 = sshll.u32 %s3553_s4, 4  ;;  %s3418_s21 = scalar_lea.hbm %s4211_s8, 512  ;;  %s583_s29 = int_to_ptr.vmem [resolvable:$true] %s3692_s29 }
  0x17   : > { %p3686_p5 = pnand %p4229_p2, %p3305_p4  ;;  %p3419_p6 = scmp.ne.s32.totalorder %s4211_s8, %s3418_s21 }
  0x18   : > { %p3425_p10 = scmp.lt.u32.totalorder %s3418_s21, %s4211_s8 }
  0x19   : > { %p3702_p7 = pneg %p3686_p5 }
  0x1b   : > { %p3421_p8 = pnand %p3702_p7, %p3419_p6 }
  0x1d   : > { %p3422_p9 = pneg %p3421_p8 }
  0x1f   : > { %p3427_p11 = pnand %p3425_p10, %p3422_p9 }
  0x21   : > { %3430 = shalt.err (!%p3427_p11)
}
  0x22   : > { %s3431_s30 = scalar_lea.vmem %s3674_s23, 512  ;;  %p3439_p1 = scmp.lt.s32.totalorder %s3674_s23, %s3674_s23 }
  0x23   : > { %p3432_p12 = scmp.ne.s32.totalorder %s3674_s23, %s3431_s30  ;;  %p3440_p4 = scmp.lt.s32.totalorder %s3431_s30, %s3431_s30 }
  0x25   : > { %p3434_p13 = pnand %p3432_p12, %p3702_p7  ;;  %p3441_p6 = por %p3440_p4, %p3439_p1 }
  0x27   : > { %p3435_p0 = pneg %p3434_p13 }
  0x29   : > { %p3442_p8 = pnand %p3441_p6, %p3435_p0 }
  0x2b   : > { %3445 = shalt.err (!%p3442_p8)
}
  0x2c   : > { %s3554_s0 = smov 64   ;;  %s3555_s21 = smov 4  }
  0x2d   : > { %3311 = dma.hbm_to_vmem [thread:$0]  (!%p3686_p5), %s4211_s8, 512, %s3674_s23, [#allocation5], %s3554_s0, %s3554_s0, %s3555_s21  }
  0x2e   : > { %s4245_s20 = sld [smem:[#allocation15_spill]] }
  0x34   : > { %s3446_s30 = scalar_lea.hbm %s4245_s20, 128 }
  0x35   : > { %p3447_p9 = scmp.ne.s32.totalorder %s4245_s20, %s3446_s30  ;;  %p3453_p12 = scmp.lt.u32.totalorder %s3446_s30, %s4245_s20 }
  0x37   : > { %p3449_p10 = pnand %p3447_p9, %p3702_p7 }
  0x39   : > { %p3450_p11 = pneg %p3449_p10 }
  0x3b   : > { %p3455_p13 = pnand %p3453_p12, %p3450_p11 }
  0x3d   : > { %3458 = shalt.err (!%p3455_p13)
}
  0x3e   : > { %s3459_s23 = scalar_lea.vmem %s3682_s3, 128  ;;  %p3467_p6 = scmp.lt.s32.totalorder %s3682_s3, %s3682_s3 }
  0x3f   : > { %p3460_p0 = scmp.ne.s32.totalorder %s3682_s3, %s3459_s23  ;;  %p3468_p8 = scmp.lt.s32.totalorder %s3459_s23, %s3459_s23 }
  0x41   : > { %p3462_p1 = pnand %p3460_p0, %p3702_p7  ;;  %p3469_p9 = por %p3468_p8, %p3467_p6 }
  0x43   : > { %p3463_p4 = pneg %p3462_p1 }
  0x45   : > { %p3470_p10 = pnand %p3469_p9, %p3463_p4 }
  0x47   : > { %3473 = shalt.err (!%p3470_p10)
}
  0x48   : > { %3308 = dma.hbm_to_vmem [thread:$0]  (!%p3686_p5), %s4245_s20, 128, %s3682_s3, [#allocation3]  }
  0x49   : > { %s3474_s22 = scalar_lea.hbm %s4215_s12, 512 }
  0x4a   : > { %p3475_p11 = scmp.ne.s32.totalorder %s4215_s12, %s3474_s22  ;;  %p3481_p0 = scmp.lt.u32.totalorder %s3474_s22, %s4215_s12 }
  0x4c   : > { %p3477_p12 = pnand %p3475_p11, %p3702_p7 }
  0x4e   : > { %p3478_p13 = pneg %p3477_p12 }
  0x50   : > { %p3483_p1 = pnand %p3481_p0, %p3478_p13 }
  0x52   : > { %3486 = shalt.err (!%p3483_p1)
}
  0x53   : > { %s3487_s3 = scalar_lea.vmem %s3690_s28, 512  ;;  %p3495_p9 = scmp.lt.s32.totalorder %s3690_s28, %s3690_s28 }
  0x54   : > { %p3488_p4 = scmp.ne.s32.totalorder %s3690_s28, %s3487_s3  ;;  %p3496_p10 = scmp.lt.s32.totalorder %s3487_s3, %s3487_s3 }
  0x56   : > { %p3490_p6 = pnand %p3488_p4, %p3702_p7  ;;  %p3497_p11 = por %p3496_p10, %p3495_p9 }
  0x58   : > { %p3491_p8 = pneg %p3490_p6 }
  0x5a   : > { %p3498_p12 = pnand %p3497_p11, %p3491_p8 }
  0x5c   : > { %3501 = shalt.err (!%p3498_p12)
}
  0x5d   : > { %3314 = dma.hbm_to_vmem [thread:$0]  (!%p3686_p5), %s4215_s12, 512, %s3690_s28, [#allocation5], %s3554_s0, %s3554_s0, %s3555_s21  }
  0x5e   : > { %s3502_s19 = scalar_lea.hbm %s4221_s18, 256 }
  0x5f   : > { %p3503_p13 = scmp.ne.s32.totalorder %s4221_s18, %s3502_s19  ;;  %p3509_p4 = scmp.lt.u32.totalorder %s3502_s19, %s4221_s18 }
  0x61   : > { %p3505_p0 = pnand %p3503_p13, %p3702_p7 }
  0x63   : > { %p3506_p1 = pneg %p3505_p0 }
  0x65   : > { %p3511_p6 = pnand %p3509_p4, %p3506_p1 }
  0x67   : > { %3514 = shalt.err (!%p3511_p6)
}
  0x68   : > { %s3515_s30 = scalar_lea.vmem %s583_s29, 256  ;;  %p3523_p11 = scmp.lt.s32.totalorder %s583_s29, %s583_s29 }
  0x69   : > { %p3516_p8 = scmp.ne.s32.totalorder %s583_s29, %s3515_s30  ;;  %p3524_p12 = scmp.lt.s32.totalorder %s3515_s30, %s3515_s30 }
  0x6b   : > { %p3518_p9 = pnand %p3516_p8, %p3702_p7  ;;  %p3525_p2 = por %p3524_p12, %p3523_p11 }
  0x6d   : > { %p3519_p10 = pneg %p3518_p9 }
  0x6f   : > { %p3526_p3 = pnand %p3525_p2, %p3519_p10 }
  0x71   : > { %3529 = shalt.err (!%p3526_p3)
}
  0x72   : > { %3317 = dma.hbm_to_vmem [thread:$0]  (!%p3686_p5), %s4221_s18, 256, %s583_s29, [#allocation8], %s3554_s0, %s3554_s0, %s3555_s21  }
  0x73   : > { %p4246_p13 = scmp.ne.s32.totalorder %s4242_s2, 0 }
  0x74   : > { %p4247_p7 = scmp.eq.s32.totalorder (!%p4246_p13), %s3669_s24, 0 }
  0x75   : > { %614 = sbr.rel (%p4246_p13) target bundleno = 5298 (0x14b2), region = 100 }
  0x7c   : > { %3535 = dma.done.wait (%p4247_p7), [#allocation3], 128   ;;  %p4248_p0 = pmov %p4247_p7 }
  0x7e   : > { %3537 = vsyncadd (%p4248_p0), [#allocation3], 4294967168  ;;  %p4249_p2 = pmov %p4248_p0 }
  0x7f   : > { %p4250_p3 = pmov %p4248_p0 }
  0x80   : > { %3539 = dma.done.wait (%p4249_p2), [#allocation5], 1024  }
  0x81   : > { %3541 = vsyncadd (%p4250_p3), [#allocation5], 4294966272  ;;  %p4251_p1 = pmov %p4248_p0 }
  0x82   : > { %p4252_p5 = pmov %p4248_p0 }
  0x83   : > { %3543 = dma.done.wait (%p4251_p1), [#allocation8], 256  }
  0x84   : > { %3545 = vsyncadd (%p4252_p5), [#allocation8], 4294967040  ;;  %p685_p4 = scmp.lt.s32.totalorder %s3669_s24, 1  ;;  %s4253_s29 = sld [smem:[#allocation13_spill]]  ;;  %v698_v1 = vld [vmem:[#allocation2] sm:$0xff]  ;;  %vm710_vm0 = vcmask 261120  }
  0x85   : > { %s4254_s15 = sld [smem:[#allocation16_spill]]  ;;  %v3342_v11 = vld [vmem:[%s4209_s6] sm:$0xff]   ;;  %v3343_v12 = vld [vmem:[%s4209_s6 + $0x10] sm:$0xff]   ;;  %v3556_v13 = vmov 0.0   ;;  %v3344_v14 = vld [vmem:[%s4209_s6 + $0x8] sm:$0xff]   ;;  %vm3557_vm1 = vmmov 0  }
  0x86   : > { %s4264_s24 = smov (!%p685_p4, %s3669_s24), 1  ;;  %3073 = vmatprep.subr.bf16.mxu0 %v3556_v13  ;;  %3081 = vmatprep.subr.bf16.mxu1 %v3556_v13  ;;  %v3345_v15 = vld [vmem:[%s4209_s6 + $0x18] sm:$0xff]   ;;  %s4255_s2 = sld [smem:[#allocation17_spill]]  ;;  %v2847_v22 = vld [vmem:[%s4208_s5] ss:$0 sm:$0xff]  ;;  %v3347_v26 = vld [vmem:[%s4209_s6 + $0x30] sm:$0xff]  }
  0x87   : > { %s2843_s1 = sshll.u32 %s4264_s24, 3  ;;  %3074 = vmatpush3.bf16.msra.mxu0 %v3342_v11  ;;  %3082 = vmatpush3.bf16.msra.mxu1 %v3343_v12  ;;  %v3346_v25 = vld [vmem:[%s4209_s6 + $0x20] sm:$0xff]   ;;  %v3348_v28 = vld [vmem:[%s4209_s6 + $0x28] sm:$0xff]   ;;  %v3349_v29 = vld [vmem:[%s4209_s6 + $0x38] sm:$0xff]   ;;  %vm1134_vm2 = vcmask 130048   ;;  %vm1255_vm3 = vcmask 1043456  }
  0x88   : > { %3075 = vmatprep.subr.bf16.mxu0 %v3556_v13  ;;  %3083 = vmatprep.subr.bf16.mxu1 %v3556_v13  ;;  %v3350_v30 = vld [vmem:[%s4209_s6 + $0x40] sm:$0xff]   ;;  %v3351_v31 = vld [vmem:[%s4209_s6 + $0x50] sm:$0xff]   ;;  %v3352_v32 = vld [vmem:[%s4209_s6 + $0x48] sm:$0xff]   ;;  %s4256_s3 = sld [smem:[#allocation14_spill]]  ;;  %vm1227_vm4 = vcmask 64512   ;;  %vm1624_vm6 = vcmask 523264  }
  0x89   : > { %3077 = vmatprep.mubr.msk.bf16.mxu0 %vm3557_vm1, %v3556_v13  ;;  %3085 = vmatprep.mubr.msk.bf16.mxu1 %vm3557_vm1, %v3556_v13  ;;  %v3353_v33 = vld [vmem:[%s4209_s6 + $0x58] sm:$0xff]   ;;  %v2850_v42 = vld [vmem:[%s4210_s7 + $0x2] ss:$0 sm:$0xff]  ;;  %v2851_v43 = vld [vmem:[%s4210_s7 + $0x3] ss:$0 sm:$0xff]  ;;  %s4258_s4 = sld [smem:[#allocation19_spill]] }
  0x8a   : > { %s688_s0 = scalar_lea.vmem %s4253_s29, %s2843_s1  ;;  %v2848_v56 = vld [vmem:[%s4210_s7] ss:$0 sm:$0xff]  ;;  %v2849_v57 = vld [vmem:[%s4210_s7 + $0x1] ss:$0 sm:$0xff]  ;;  %v2852_v60 = vld [vmem:[%s4210_s7 + $0x4] ss:$0 sm:$0xff] }
  0x8b   : > { %v697_v0 = vld [vmem:[%s688_s0] sm:$0xff]  ;;  %3076 = vmatpush3.bf16.msra.mxu0 %v3344_v14  ;;  %3084 = vmatpush3.bf16.msra.mxu1 %v3345_v15  ;;  %s4257_s29 = sld [smem:[#allocation18_spill]]  ;;  %s4260_s25 = sld [smem:[#allocation21_spill]] }
  0x8c   : > { %v2845_v2 = vld [vmem:[%s4254_s15] ss:$0 sm:$0xff]  ;;  %v699_v3 = vadd.f32 %v698_v1, %v697_v0  ;;  %3089 = vmatprep.subr.bf16.mxu0 %v3556_v13  ;;  %3097 = vmatprep.subr.bf16.mxu1 %v3556_v13  ;;  %v2853_v61 = vld [vmem:[%s4210_s7 + $0x5] ss:$0 sm:$0xff]  ;;  %s4261_s28 = sld [smem:[#allocation22_spill]] }
  0x8d   : > { %v2846_v20 = vld [vmem:[%s4255_s2] ss:$0 sm:$0xff] }
  0x8e   : > { %v707_v4 = vadd.f32 %v2845_v2, %v699_v3  ;;  %s691_s2 = scalar_lea.vmem %s4256_s3, %s4264_s24  ;;  %s4259_s3 = sld [smem:[#allocation20_spill]] }
  0x90   : > { %v711_v5 = vsel %vm710_vm0, %v707_v4, 0.0 }
  0x91   : > { %712 = vadd.xlane.f32.xlu0 %v711_v5 }
 0x11e   : > { %v713_v6 = vpop.xlane.xlu0 %712 }
 0x11f   : > { %v715_v7 = vmul.f32 0.03125, %v713_v6 }
 0x121   : > { %v716_v8 = vsub.f32 %v707_v4, %v715_v7 }
 0x123   : > { %v717_v9 = vmul.f32 %v716_v8, %v716_v8 }
 0x125   : > { %v718_v10 = vsel %vm710_vm0, %v717_v9, 0.0 }
 0x126   : > { %719 = vadd.xlane.f32.xlu0 %v718_v10 }
 0x1b3   : > { %v720_v16 = vpop.xlane.xlu0 %719 }
 0x1b4   : > { %v721_v17 = vmul.f32 0.03125, %v720_v16 }
 0x1b6   : > { %v722_v18 = vadd.f32 1e-12, %v721_v17  ;;  %v3944_v17 = vld [vmem:[%s691_s2] ss:$0 sm:$0xff]  ;;  %s695_s2 = scalar_lea.vmem %s4261_s28, %s2843_s1 }
 0x1b8   : > { %3384 = vrsqrt.f32 %v722_v18 }
 0x1c2   : > { %v3385_v19 = vpop.eup %3384 }
 0x1c3   : > { %v724_v21 = vmul.f32 %v3385_v19, %v716_v8 }
 0x1c5   : > { %v731_v23 = vmul.f32 %v2846_v20, %v724_v21 }
 0x1c7   : > { %v3854_v24 = vadd.f32 %v2847_v22, %v731_v23 }
 0x1c9   : > { %v740_v27 = vpack.c.bf16 %v3854_v24, %v3854_v24 }
 0x1cb   : > { %3078 = vmatmul.mubr.msk.bf16.vlgmr.msra.gmra.mrb[0].mxu0 %vm710_vm0, %v740_v27  ;;  %3086 = vmatmul.mubr.msk.bf16.vlgmr.msra.gmra.mrb[0].mxu1 %vm710_vm0, %v740_v27 }
 0x1cc   : > { %3090 = vmatpush3.bf16.msra.mxu0 %v3346_v25  ;;  %3098 = vmatpush3.bf16.msra.mxu1 %v3347_v26 }
 0x1cd   : > { %3091 = vmatprep.subr.bf16.mxu0 %v3556_v13  ;;  %3099 = vmatprep.subr.bf16.mxu1 %v3556_v13 }
 0x1ce   : > { %3093 = vmatprep.mubr.msk.bf16.mxu0 %vm3557_vm1, %v3556_v13  ;;  %3101 = vmatprep.mubr.msk.bf16.mxu1 %vm3557_vm1, %v3556_v13 }
 0x1d0   : > { %3092 = vmatpush3.bf16.msra.mxu0 %v3348_v28  ;;  %3100 = vmatpush3.bf16.msra.mxu1 %v3349_v29 }
 0x1d1   : > { %3105 = vmatprep.subr.bf16.mxu0 %v3556_v13  ;;  %3113 = vmatprep.subr.bf16.mxu1 %v3556_v13 }
 0x1d3   : > { %3094 = vmatmul.mubr.msk.bf16.vlgmr.msra.gmra.mrb[4].mxu0 %vm710_vm0, %v740_v27  ;;  %3102 = vmatmul.mubr.msk.bf16.vlgmr.msra.gmra.mrb[4].mxu1 %vm710_vm0, %v740_v27 }
 0x1d4   : > { %3106 = vmatpush3.bf16.msra.mxu0 %v3350_v30  ;;  %3114 = vmatpush3.bf16.msra.mxu1 %v3351_v31 }
 0x1d5   : > { %3107 = vmatprep.subr.bf16.mxu0 %v3556_v13  ;;  %3115 = vmatprep.subr.bf16.mxu1 %v3556_v13 }
 0x1d6   : > { %3109 = vmatprep.mubr.msk.bf16.mxu0 %vm3557_vm1, %v3556_v13  ;;  %3117 = vmatprep.mubr.msk.bf16.mxu1 %vm3557_vm1, %v3556_v13 }
 0x1d8   : > { %3108 = vmatpush3.bf16.msra.mxu0 %v3352_v32  ;;  %3116 = vmatpush3.bf16.msra.mxu1 %v3353_v33 }
 0x1d9   : > { %3121 = vmatprep.subr.bf16.mxu0 %v3556_v13  ;;  %3127 = vmatprep.subr.bf16.mxu1 %v3556_v13 }
 0x1db   : > { %3110 = vmatmul.mubr.msk.bf16.vlgmr.msra.gmra.mrb[8].mxu0 %vm710_vm0, %v740_v27  ;;  %3118 = vmatmul.mubr.msk.bf16.vlgmr.msra.gmra.mrb[8].mxu1 %vm710_vm0, %v740_v27 }
 0x1dc   : > { %3123 = vmatprep.mubr.msk.bf16.mxu0 %vm3557_vm1, %v3556_v13  ;;  %3129 = vmatprep.mubr.msk.bf16.mxu1 %vm3557_vm1, %v3556_v13 }
 0x29e   : > { %v856_v34 = vpop.f32.mrb[0].mxu0  ;;  %v908_v35 = vpop.f32.mrb[0].mxu1 }
 0x29f   : > { %v3079_v36 = vpop.f32.mrb[1].mxu0  ;;  %v3087_v37 = vpop.f32.mrb[1].mxu1  ;;  %v857_v62 = vadd.f32 %v2848_v56, %v856_v34  ;;  %v909_v63 = vadd.f32 %v2849_v57, %v908_v35 }
 0x2a0   : > { %v859_v38 = vpop.f32.mrb[2].mxu0  ;;  %v911_v39 = vpop.f32.mrb[2].mxu1 }
 0x2a1   : > { %v3080_v40 = vpop.f32.mrb[3].mxu0  ;;  %v3088_v41 = vpop.f32.mrb[3].mxu1  ;;  %v1122_v8 = vpack.c.bf16 %v857_v62, %v857_v62  ;;  %v1123_v9 = vpack.c.bf16 %v909_v63, %v909_v63 }
 0x2a6   : > { %v960_v44 = vpop.f32.mrb[4].mxu0  ;;  %v1012_v45 = vpop.f32.mrb[4].mxu1 }
 0x2a7   : > { %v961_v46 = vadd.f32 %v2850_v42, %v960_v44  ;;  %v1013_v47 = vadd.f32 %v2851_v43, %v1012_v45  ;;  %v3095_v48 = vpop.f32.mrb[5].mxu0  ;;  %v3103_v49 = vpop.f32.mrb[5].mxu1 }
 0x2a8   : > { %v963_v50 = vpop.f32.mrb[6].mxu0  ;;  %v1015_v51 = vpop.f32.mrb[6].mxu1  ;;  %v3354_v49 = vld [vmem:[#allocation4] sm:$0xff]  }
 0x2a9   : > { %v1124_v52 = vpack.c.bf16 %v961_v46, %v961_v46  ;;  %v1125_v53 = vpack.c.bf16 %v1013_v47, %v1013_v47  ;;  %v3096_v54 = vpop.f32.mrb[7].mxu0  ;;  %v3104_v55 = vpop.f32.mrb[7].mxu1  ;;  %v3355_v50 = vld [vmem:[#allocation4 + $0x8] sm:$0xff]  }
 0x2ab   : > { %v1139_v58 = vsel %vm1134_vm2, %v1124_v52, 0  ;;  %v1185_v59 = vsel %vm1134_vm2, %v1125_v53, 0 }
 0x2ac   : > { %3122 = vmatpush3.bf16.xpose.msra.mxu0 %v1139_v58  ;;  %3128 = vmatpush3.bf16.xpose.msra.mxu1 %v1185_v59 }
 0x2ad   : > { %3133 = vmatprep.subr.bf16.mxu0 %v3556_v13  ;;  %3139 = vmatprep.subr.bf16.mxu1 %v3556_v13 }
 0x2ae   : > { %v1064_v0 = vpop.f32.mrb[8].mxu0  ;;  %v1116_v1 = vpop.f32.mrb[8].mxu1 }
 0x2af   : > { %v1065_v2 = vadd.f32 %v2852_v60, %v1064_v0  ;;  %v1117_v3 = vadd.f32 %v2853_v61, %v1116_v1  ;;  %v3111_v4 = vpop.f32.mrb[9].mxu0  ;;  %v3119_v5 = vpop.f32.mrb[9].mxu1 }
 0x2b0   : > { %v1067_v6 = vpop.f32.mrb[10].mxu0  ;;  %v1119_v7 = vpop.f32.mrb[10].mxu1  ;;  %v2881_v4 = vld [vmem:[%s4212_s9] ss:$0 sm:$0xff] }
 0x2b1   : > { %v1126_v10 = vpack.c.bf16 %v1065_v2, %v1065_v2  ;;  %v1127_v11 = vpack.c.bf16 %v1117_v3, %v1117_v3  ;;  %v3112_v12 = vpop.f32.mrb[11].mxu0  ;;  %v3120_v14 = vpop.f32.mrb[11].mxu1 }
 0x2b3   : > { %v1257_v15 = vsel %vm1255_vm3, %v1126_v10, 0  ;;  %v1303_v16 = vsel %vm1255_vm3, %v1127_v11, 0  ;;  %3124 = vmatmul.mubr.msk.bf16.vlgmr.msra.gmra.mrb[12].mxu0 %vm1134_vm2, %v1122_v8  ;;  %3130 = vmatmul.mubr.msk.bf16.vlgmr.msra.gmra.mrb[12].mxu1 %vm1134_vm2, %v1123_v9 }
 0x2b4   : > { %3134 = vmatpush3.bf16.msra.mxu0 %v1257_v15  ;;  %3140 = vmatpush3.bf16.msra.mxu1 %v1303_v16 }
 0x2b5   : > { %3135 = vmatprep.mubr.msk.bf16.mxu0 %vm3557_vm1, %v3556_v13  ;;  %3141 = vmatprep.mubr.msk.bf16.mxu1 %vm3557_vm1, %v3556_v13 }
 0x2b6   : > { %3145 = vmatprep.subr.bf16.mxu0 %v3556_v13  ;;  %3151 = vmatprep.subr.bf16.mxu1 %v3556_v13 }
 0x386   : > { %v1175_v18 = vpop.f32.mrb[12].mxu0  ;;  %v1221_v19 = vpop.f32.mrb[12].mxu1 }
 0x387   : > { %v1176_v20 = vadd.f32 %v3944_v17, %v1175_v18  ;;  %v3125_v21 = vpop.f32.mrb[13].mxu0  ;;  %v3131_v22 = vpop.f32.mrb[13].mxu1  ;;  %v1222_v26 = vadd.f32 %v3944_v17, %v1221_v19  ;;  %v3356_v19 = vld [vmem:[#allocation6] sm:$0xff]  }
 0x388   : > { %v1178_v23 = vpop.f32.mrb[14].mxu0  ;;  %v1224_v25 = vpop.f32.mrb[14].mxu1 }
 0x389   : > { %v3126_v27 = vpop.f32.mrb[15].mxu0  ;;  %v3132_v28 = vpop.f32.mrb[15].mxu1  ;;  %v1228_v29 = vsel %vm1227_vm4, %v1176_v20, -inf  ;;  %v1231_v30 = vsel %vm1227_vm4, %v1222_v26, -inf  ;;  %v2882_v25 = vld [vmem:[%s4213_s10] ss:$0 sm:$0xff] }
 0x38a   : > { %1229 = vmax.xlane.f32.xlu1 %v1228_v29  ;;  %v2883_v27 = vld [vmem:[%s4214_s11] ss:$0 sm:$0xff] }
 0x38e   : > { %1232 = vmax.xlane.f32.xlu1 %v1231_v30 }
 0x417   : > { %v1230_v31 = vpop.xlane.xlu1 %1229 }
 0x418   : > { %v1234_v32 = vsub.f32 %v1176_v20, %v1230_v31  ;;  %v3357_v20 = vld [vmem:[#allocation6 + $0x8] sm:$0xff]   ;;  %v3358_v31 = vld [vmem:[%s4217_s14] sm:$0xff]  }
 0x41a   : > { %v1236_v33 = vmul.f32 1.442695, %v1234_v32  ;;  %v3359_v32 = vld [vmem:[%s4217_s14 + $0x8] sm:$0xff]  }
 0x41b   : > { %v1233_v34 = vpop.xlane.xlu1 %1232 }
 0x41c   : > { %3386 = vpow2.f32 %v1236_v33  ;;  %v1235_v35 = vsub.f32 %v1222_v26, %v1233_v34  ;;  %v3360_v33 = vld [vmem:[%s4217_s14 + $0x10] sm:$0xff]   ;;  %v3361_v34 = vld [vmem:[%s4217_s14 + $0x18] sm:$0xff]  }
 0x41e   : > { %v1238_v36 = vmul.f32 1.442695, %v1235_v35  ;;  %v2884_v35 = vld [vmem:[%s4216_s13] ss:$0 sm:$0xff] }
 0x420   : > { %3388 = vpow2.f32 %v1238_v36 }
 0x426   : > { %v3387_v37 = vpop.eup %3386 }
 0x427   : > { %v1240_v38 = vsel %vm1227_vm4, %v3387_v37, 0.0 }
 0x428   : > { %1241 = vadd.xlane.f32.xlu0 %v1240_v38 }
 0x42a   : > { %v3389_v39 = vpop.eup %3388 }
 0x42b   : > { %v1243_v40 = vsel %vm1227_vm4, %v3389_v39, 0.0 }
 0x42c   : > { %1244 = vadd.xlane.f32.xlu1 %v1243_v40 }
 0x4b5   : > { %v1242_v41 = vpop.xlane.xlu0 %1241 }
 0x4b6   : > { %3390 = vrcp.f32 %v1242_v41 }
 0x4b9   : > { %v1245_v42 = vpop.xlane.xlu1 %1244 }
 0x4ba   : > { %3392 = vrcp.f32 %v1245_v42 }
 0x4c0   : > { %v3391_v43 = vpop.eup %3390 }
 0x4c1   : > { %v1248_v44 = vmul.f32 %v3391_v43, %v3387_v37 }
 0x4c3   : > { %v1250_v45 = vpack.c.bf16 %v1248_v44, %v1248_v44 }
 0x4c4   : > { %v3393_v46 = vpop.eup %3392 }
 0x4c5   : > { %v1249_v47 = vmul.f32 %v3393_v46, %v3389_v39  ;;  %3136 = vmatmul.mubr.msk.bf16.vlgmr.msra.gmra.mrb[16].mxu0 %vm1227_vm4, %v1250_v45 }
 0x4c6   : > { %3147 = vmatprep.mubr.msk.bf16.mxu0 %vm3557_vm1, %v3556_v13  ;;  %3146 = vmatpush3.bf16.msra.mxu0 %v3354_v49 }
 0x4c7   : > { %v1251_v48 = vpack.c.bf16 %v1249_v47, %v1249_v47  ;;  %3157 = vmatprep.subr.bf16.mxu0 %v3556_v13 }
 0x4c9   : > { %3142 = vmatmul.mubr.msk.bf16.vlgmr.msra.gmra.mrb[16].mxu1 %vm1227_vm4, %v1251_v48 }
 0x4ca   : > { %3153 = vmatprep.mubr.msk.bf16.mxu1 %vm3557_vm1, %v3556_v13  ;;  %3152 = vmatpush3.bf16.msra.mxu1 %v3355_v50 }
 0x4cb   : > { %3165 = vmatprep.subr.bf16.mxu1 %v3556_v13 }
 0x598   : > { %v1293_v51 = vpop.f32.mrb[16].mxu0 }
 0x599   : > { %v1345_v52 = vpack.c.bf16 %v1293_v51, %v1293_v51  ;;  %v3137_v53 = vpop.f32.mrb[17].mxu0 }
 0x59a   : > { %v1296_v54 = vpop.f32.mrb[18].mxu0 }
 0x59b   : > { %v3138_v55 = vpop.f32.mrb[19].mxu0  ;;  %3148 = vmatmul.mubr.msk.bf16.vlgmr.msra.gmra.mrb[20].mxu0 %vm1134_vm2, %v1345_v52 }
 0x59c   : > { %v1339_v56 = vpop.f32.mrb[16].mxu1  ;;  %3161 = vmatprep.mubr.msk.bf16.mxu0 %vm3557_vm1, %v3556_v13  ;;  %3158 = vmatpush3.bf16.msra.mxu0 %v3356_v19  ;;  %v3363_v19 = vld [vmem:[%s4209_s6 + $0x80] sm:$0xff]  }
 0x59d   : > { %v1346_v57 = vpack.c.bf16 %v1339_v56, %v1339_v56  ;;  %v3143_v58 = vpop.f32.mrb[17].mxu1  ;;  %3159 = vmatprep.subr.bf16.mxu0 %v3556_v13 }
 0x59e   : > { %v1342_v59 = vpop.f32.mrb[18].mxu1 }
 0x59f   : > { %v3144_v60 = vpop.f32.mrb[19].mxu1  ;;  %3154 = vmatmul.mubr.msk.bf16.vlgmr.msra.gmra.mrb[20].mxu1 %vm1134_vm2, %v1346_v57 }
 0x5a0   : > { %3173 = vmatprep.mubr.msk.bf16.mxu1 %vm3557_vm1, %v3556_v13  ;;  %3160 = vmatpush3.bf16.msra.mxu0 %v3357_v20  ;;  %v3364_v20 = vld [vmem:[%s4209_s6 + $0x68] sm:$0xff]  }
 0x5a1   : > { %3177 = vmatprep.subr.bf16.mxu0 %v3556_v13  ;;  %3166 = vmatpush3.bf16.msra.mxu1 %v3358_v31  ;;  %v3366_v31 = vld [vmem:[%s4209_s6 + $0x70] sm:$0xff]  }
 0x5a2   : > { %3167 = vmatprep.subr.bf16.mxu1 %v3556_v13 }
 0x5a5   : > { %3168 = vmatpush3.bf16.msra.mxu1 %v3359_v32  ;;  %v3367_v32 = vld [vmem:[%s4209_s6 + $0xa0] sm:$0xff]  }
 0x5a6   : > { %3169 = vmatprep.subr.bf16.mxu1 %v3556_v13 }
 0x5a9   : > { %3170 = vmatpush3.bf16.msra.mxu1 %v3360_v33 }
 0x5aa   : > { %3171 = vmatprep.subr.bf16.mxu1 %v3556_v13 }
 0x5ad   : > { %3172 = vmatpush3.bf16.msra.mxu1 %v3361_v34  ;;  %v3368_v34 = vld [vmem:[%s4209_s6 + $0x78] sm:$0xff]  }
 0x5ae   : > { %3193 = vmatprep.subr.bf16.mxu1 %v3556_v13 }
 0x66e   : > { %v1394_v61 = vpop.f32.mrb[20].mxu0 }
 0x66f   : > { %v3149_v62 = vpop.f32.mrb[21].mxu0  ;;  %v1449_v2 = vsel %vm710_vm0, %v1394_v61, 0.0 }
 0x670   : > { %v1397_v63 = vpop.f32.mrb[22].mxu0 }
 0x671   : > { %v3150_v0 = vpop.f32.mrb[23].mxu0 }
 0x672   : > { %v1443_v1 = vpop.f32.mrb[20].mxu1 }
 0x673   : > { %v1450_v3 = vsel %vm710_vm0, %v1443_v1, 0.0  ;;  %v3155_v5 = vpop.f32.mrb[21].mxu1 }
 0x674   : > { %v1451_v6 = vadd.f32 %v1450_v3, %v1449_v2  ;;  %v1446_v7 = vpop.f32.mrb[22].mxu1  ;;  %v2888_v3 = vld [vmem:[%s4257_s29] ss:$0 sm:$0xff] }
 0x675   : > { %v3156_v8 = vpop.f32.mrb[23].mxu1 }
 0x676   : > { %v1459_v9 = vadd.f32 %v2881_v4, %v1451_v6 }
 0x678   : > { %v1460_v10 = vadd.f32 %v1459_v9, %v3854_v24 }
 0x67a   : > { %v1463_v11 = vsel %vm710_vm0, %v1460_v10, 0.0 }
 0x67b   : > { %1464 = vadd.xlane.f32.xlu0 %v1463_v11 }
 0x708   : > { %v1465_v12 = vpop.xlane.xlu0 %1464 }
 0x709   : > { %v1466_v14 = vmul.f32 0.03125, %v1465_v12 }
 0x70b   : > { %v1467_v15 = vsub.f32 %v1460_v10, %v1466_v14 }
 0x70d   : > { %v1468_v16 = vmul.f32 %v1467_v15, %v1467_v15 }
 0x70f   : > { %v1469_v18 = vsel %vm710_vm0, %v1468_v16, 0.0 }
 0x710   : > { %1470 = vadd.xlane.f32.xlu1 %v1469_v18  ;;  %v3362_v18 = vld [vmem:[%s4209_s6 + $0x60] sm:$0xff]  }
 0x79d   : > { %v1471_v21 = vpop.xlane.xlu1 %1470 }
 0x79e   : > { %v1472_v24 = vmul.f32 0.03125, %v1471_v21  ;;  %v3365_v21 = vld [vmem:[%s4209_s6 + $0x88] sm:$0xff]  }
 0x7a0   : > { %v1473_v22 = vadd.f32 1e-12, %v1472_v24 }
 0x7a2   : > { %3394 = vrsqrt.f32 %v1473_v22 }
 0x7ac   : > { %v3395_v23 = vpop.eup %3394 }
 0x7ad   : > { %v1475_v26 = vmul.f32 %v3395_v23, %v1467_v15 }
 0x7af   : > { %v1482_v28 = vmul.f32 %v2882_v25, %v1475_v26  ;;  %v2894_v26 = vld [vmem:[%s4258_s4] ss:$0 sm:$0xff] }
 0x7b1   : > { %v1489_v29 = vadd.f32 %v2883_v27, %v1482_v28  ;;  %v2895_v28 = vld [vmem:[%s4259_s3] ss:$0 sm:$0xff] }
 0x7b3   : > { %v1490_v30 = vpack.c.bf16 %v1489_v29, %v1489_v29 }
 0x7b5   : > { %3162 = vmatmul.mubr.msk.bf16.vlgmr.msra.gmra.mrb[24].mxu0 %vm710_vm0, %v1490_v30 }
 0x7b6   : > { %3181 = vmatprep.mubr.msk.bf16.mxu0 %vm3557_vm1, %v3556_v13  ;;  %3178 = vmatpush3.bf16.msra.mxu0 %v3362_v18 }
 0x7b7   : > { %3179 = vmatprep.subr.bf16.mxu0 %v3556_v13 }
 0x7ba   : > { %3180 = vmatpush3.bf16.msra.mxu0 %v3364_v20 }
 0x7bb   : > { %3185 = vmatprep.subr.bf16.mxu0 %v3556_v13 }
 0x888   : > { %v1551_v36 = vpop.f32.mrb[24].mxu0 }
 0x889   : > { %v1552_v37 = vadd.f32 %v2884_v35, %v1551_v36  ;;  %v3163_v38 = vpop.f32.mrb[25].mxu0  ;;  %v3369_v35 = vld [vmem:[%s4209_s6 + $0xa8] sm:$0xff]   ;;  %v3370_v36 = vld [vmem:[%s4209_s6 + $0x90] sm:$0xff]  }
 0x88a   : > { %v1554_v39 = vpop.f32.mrb[26].mxu0  ;;  %v3372_v38 = vld [vmem:[%s4209_s6 + $0xb0] sm:$0xff]  }
 0x88b   : > { %v1558_v40 = vmul.f32 0.70710677, %v1552_v37  ;;  %v3164_v41 = vpop.f32.mrb[27].mxu0  ;;  %v1557_v63 = vmul.f32 0.5, %v1552_v37  ;;  %v3371_v37 = vld [vmem:[%s4209_s6 + $0x98] sm:$0xff]  }
 0x88c   : > { %v3373_v39 = vld [vmem:[%s4209_s6 + $0xb8] sm:$0xff]  }
 0x88d   : > { %v1559_v42 = vand.u32 2147483647, %v1558_v40  ;;  %vm1579_vm5 = vcmp.lt.f32.partialorder %v1558_v40, 0.0  ;;  %v2928_v40 = vld [vmem:[%s4210_s7 + $0x8] ss:$0 sm:$0xff] }
 0x88f   : > { %v1560_v43 = vmul.f32 0.3275911, %v1559_v42  ;;  %v1573_v45 = vmul.f32 %v1559_v42, %v1559_v42 }
 0x891   : > { %v1561_v44 = vadd.f32 1.0, %v1560_v43  ;;  %v1574_v47 = vsub.f32 0.0, %v1573_v45 }
 0x893   : > { %3396 = vrcp.f32 %v1561_v44  ;;  %v1575_v50 = vmul.f32 1.442695, %v1574_v47 }
 0x895   : > { %3398 = vpow2.f32 %v1575_v50 }
 0x89d   : > { %v3397_v46 = vpop.eup %3396 }
 0x89e   : > { %v1564_v48 = vmul.f32 1.0614054, %v3397_v46 }
 0x89f   : > { %v3399_v58 = vpop.eup %3398 }
 0x8a0   : > { %v1565_v49 = vadd.f32 -1.4531521, %v1564_v48 }
 0x8a2   : > { %v1566_v51 = vmul.f32 %v3397_v46, %v1565_v49 }
 0x8a4   : > { %v1567_v52 = vadd.f32 1.4214138, %v1566_v51  ;;  %v2926_v51 = vld [vmem:[%s4210_s7 + $0x6] ss:$0 sm:$0xff] }
 0x8a6   : > { %v1568_v53 = vmul.f32 %v3397_v46, %v1567_v52 }
 0x8a8   : > { %v1569_v54 = vadd.f32 -0.28449672, %v1568_v53  ;;  %v2930_v53 = vld [vmem:[%s4210_s7 + $0xa] ss:$0 sm:$0xff] }
 0x8aa   : > { %v1570_v55 = vmul.f32 %v3397_v46, %v1569_v54 }
 0x8ac   : > { %v1571_v56 = vadd.f32 0.2548296, %v1570_v55 }
 0x8ae   : > { %v1572_v57 = vmul.f32 %v3397_v46, %v1571_v56 }
 0x8b0   : > { %v1577_v59 = vmul.f32 %v3399_v58, %v1572_v57 }
 0x8b2   : > { %v1578_v60 = vsub.f32 1.0, %v1577_v59 }
 0x8b4   : > { %v1580_v61 = vsub.f32 0.0, %v1578_v60 }
 0x8b6   : > { %v1581_v62 = vsel %vm1579_vm5, %v1580_v61, %v1578_v60 }
 0x8b7   : > { %v1582_v0 = vadd.f32 1.0, %v1581_v62 }
 0x8b9   : > { %v1583_v1 = vmul.f32 %v1582_v0, %v1557_v63 }
 0x8bb   : > { %v1584_v2 = vpack.c.bf16 %v1583_v1, %v1583_v1 }
 0x8bd   : > { %3174 = vmatmul.mubr.msk.bf16.vlgmr.msra.gmra.mrb[24].mxu1 %vm1624_vm6, %v1584_v2 }
 0x8be   : > { %3197 = vmatprep.mubr.msk.bf16.mxu1 %vm3557_vm1, %v3556_v13  ;;  %3194 = vmatpush3.bf16.msra.mxu1 %v3363_v19 }
 0x8bf   : > { %3195 = vmatprep.subr.bf16.mxu1 %v3556_v13 }
 0x8c2   : > { %3196 = vmatpush3.bf16.msra.mxu1 %v3365_v21 }
 0x8c3   : > { %3209 = vmatprep.subr.bf16.mxu1 %v3556_v13 }
 0x990   : > { %v1662_v4 = vpop.f32.mrb[24].mxu1 }
 0x991   : > { %v1663_v5 = vadd.f32 %v2888_v3, %v1662_v4  ;;  %v3175_v6 = vpop.f32.mrb[25].mxu1  ;;  %v2929_v3 = vld [vmem:[%s4210_s7 + $0x9] ss:$0 sm:$0xff] }
 0x992   : > { %v1665_v7 = vpop.f32.mrb[26].mxu1 }
 0x993   : > { %v3176_v8 = vpop.f32.mrb[27].mxu1  ;;  %v1668_v9 = vadd.f32 %v1663_v5, %v1489_v29 }
 0x995   : > { %v1671_v10 = vsel %vm710_vm0, %v1668_v9, 0.0 }
 0x996   : > { %1672 = vadd.xlane.f32.xlu0 %v1671_v10  ;;  %v2927_v10 = vld [vmem:[%s4210_s7 + $0x7] ss:$0 sm:$0xff] }
 0xa23   : > { %v1673_v11 = vpop.xlane.xlu0 %1672 }
 0xa24   : > { %v1674_v12 = vmul.f32 0.03125, %v1673_v11 }
 0xa26   : > { %v1675_v14 = vsub.f32 %v1668_v9, %v1674_v12  ;;  %v2931_v12 = vld [vmem:[%s4210_s7 + $0xb] ss:$0 sm:$0xff] }
 0xa28   : > { %v1676_v15 = vmul.f32 %v1675_v14, %v1675_v14 }
 0xa2a   : > { %v1677_v16 = vsel %vm710_vm0, %v1676_v15, 0.0 }
 0xa2b   : > { %1678 = vadd.xlane.f32.xlu1 %v1677_v16 }
 0xab8   : > { %v1679_v24 = vpop.xlane.xlu1 %1678 }
 0xab9   : > { %v1680_v22 = vmul.f32 0.03125, %v1679_v24 }
 0xabb   : > { %v1681_v23 = vadd.f32 1e-12, %v1680_v22 }
 0xabd   : > { %3400 = vrsqrt.f32 %v1681_v23 }
 0xac7   : > { %v3401_v25 = vpop.eup %3400 }
 0xac8   : > { %v1683_v27 = vmul.f32 %v3401_v25, %v1675_v14 }
 0xaca   : > { %v1690_v29 = vmul.f32 %v2894_v26, %v1683_v27 }
 0xacc   : > { %v4034_v30 = vadd.f32 %v2895_v28, %v1690_v29 }
 0xace   : > { %v1698_v33 = vpack.c.bf16 %v4034_v30, %v4034_v30 }
 0xad0   : > { %3182 = vmatmul.mubr.msk.bf16.vlgmr.msra.gmra.mrb[28].mxu0 %vm710_vm0, %v1698_v33  ;;  %3198 = vmatmul.mubr.msk.bf16.vlgmr.msra.gmra.mrb[28].mxu1 %vm710_vm0, %v1698_v33 }
 0xad1   : > { %3186 = vmatpush3.bf16.msra.mxu0 %v3366_v31  ;;  %3210 = vmatpush3.bf16.msra.mxu1 %v3367_v32 }
 0xad2   : > { %3187 = vmatprep.subr.bf16.mxu0 %v3556_v13  ;;  %3211 = vmatprep.subr.bf16.mxu1 %v3556_v13 }
 0xad3   : > { %3189 = vmatprep.mubr.msk.bf16.mxu0 %vm3557_vm1, %v3556_v13  ;;  %3213 = vmatprep.mubr.msk.bf16.mxu1 %vm3557_vm1, %v3556_v13 }
 0xad5   : > { %3188 = vmatpush3.bf16.msra.mxu0 %v3368_v34  ;;  %3212 = vmatpush3.bf16.msra.mxu1 %v3369_v35 }
 0xad6   : > { %3201 = vmatprep.subr.bf16.mxu0 %v3556_v13  ;;  %3225 = vmatprep.subr.bf16.mxu1 %v3556_v13 }
 0xad8   : > { %3190 = vmatmul.mubr.msk.bf16.vlgmr.msra.gmra.mrb[32].mxu0 %vm710_vm0, %v1698_v33  ;;  %3214 = vmatmul.mubr.msk.bf16.vlgmr.msra.gmra.mrb[32].mxu1 %vm710_vm0, %v1698_v33 }
 0xad9   : > { %3202 = vmatpush3.bf16.msra.mxu0 %v3370_v36  ;;  %3205 = vmatprep.mubr.msk.bf16.mxu0 %vm3557_vm1, %v3556_v13 }
 0xada   : > { %3203 = vmatprep.subr.bf16.mxu0 %v3556_v13  ;;  %3227 = vmatprep.mubr.msk.bf16.mxu1 %vm3557_vm1, %v3556_v13 }
 0xadd   : > { %3204 = vmatpush3.bf16.msra.mxu0 %v3371_v37 }
 0xade   : > { %3217 = vmatprep.subr.bf16.mxu0 %v3556_v13 }
 0xae0   : > { %3206 = vmatmul.mubr.msk.bf16.vlgmr.msra.gmra.mrb[36].mxu0 %vm710_vm0, %v1698_v33 }
 0xae1   : > { %3218 = vmatpush3.bf16.msra.mxu0 %v3372_v38  ;;  %3221 = vmatprep.mubr.msk.bf16.mxu0 %vm3557_vm1, %v3556_v13 }
 0xae2   : > { %3219 = vmatprep.subr.bf16.mxu0 %v3556_v13 }
 0xae5   : > { %3220 = vmatpush3.bf16.msra.mxu0 %v3373_v39 }
 0xae6   : > { %3231 = vmatprep.subr.bf16.mxu0 %v3556_v13 }
 0xae8   : > { %3222 = vmatmul.mubr.msk.bf16.vlgmr.msra.gmra.mrb[40].mxu0 %vm710_vm0, %v1698_v33 }
 0xae9   : > { %3233 = vmatprep.mubr.msk.bf16.mxu0 %vm3557_vm1, %v3556_v13 }
 0xba3   : > { %v1816_v41 = vpop.f32.mrb[28].mxu0  ;;  %v1920_v42 = vpop.f32.mrb[28].mxu1 }
 0xba4   : > { %v1921_v43 = vadd.f32 %v2928_v40, %v1920_v42  ;;  %v3183_v44 = vpop.f32.mrb[29].mxu0  ;;  %v3199_v45 = vpop.f32.mrb[29].mxu1  ;;  %v1817_v54 = vadd.f32 %v2926_v51, %v1816_v41 }
 0xba5   : > { %v1819_v46 = vpop.f32.mrb[30].mxu0  ;;  %v1923_v47 = vpop.f32.mrb[30].mxu1 }
 0xba6   : > { %v2084_v48 = vpack.c.bf16 %v1921_v43, %v1921_v43  ;;  %v3184_v49 = vpop.f32.mrb[31].mxu0  ;;  %v3200_v50 = vpop.f32.mrb[31].mxu1  ;;  %v2082_v62 = vpack.c.bf16 %v1817_v54, %v1817_v54  ;;  %v3374_v54 = vld [vmem:[#allocation4 + $0x10] sm:$0xff]  }
 0xba8   : > { %v2092_v52 = vsel %vm1134_vm2, %v2084_v48, 0 }
 0xba9   : > { %3226 = vmatpush3.bf16.xpose.msra.mxu1 %v2092_v52 }
 0xbaa   : > { %3237 = vmatprep.subr.bf16.mxu1 %v3556_v13 }
 0xbab   : > { %v1868_v55 = vpop.f32.mrb[32].mxu0  ;;  %v2024_v56 = vpop.f32.mrb[32].mxu1 }
 0xbac   : > { %v2025_v57 = vadd.f32 %v2930_v53, %v2024_v56  ;;  %v3191_v58 = vpop.f32.mrb[33].mxu0  ;;  %v3215_v59 = vpop.f32.mrb[33].mxu1  ;;  %v1869_v14 = vadd.f32 %v2927_v10, %v1868_v55  ;;  %v3375_v55 = vld [vmem:[#allocation4 + $0x18] sm:$0xff]  }
 0xbad   : > { %v1871_v60 = vpop.f32.mrb[34].mxu0  ;;  %v2027_v61 = vpop.f32.mrb[34].mxu1 }
 0xbae   : > { %v2086_v63 = vpack.c.bf16 %v2025_v57, %v2025_v57  ;;  %v3192_v0 = vpop.f32.mrb[35].mxu0  ;;  %v3216_v1 = vpop.f32.mrb[35].mxu1  ;;  %v2083_v20 = vpack.c.bf16 %v1869_v14, %v1869_v14 }
 0xbb0   : > { %v2208_v2 = vsel %vm1255_vm3, %v2086_v63, 0  ;;  %3228 = vmatmul.mubr.msk.bf16.vlgmr.msra.gmra.mrb[36].mxu1 %vm1134_vm2, %v2082_v62 }
 0xbb1   : > { %3238 = vmatpush3.bf16.msra.mxu1 %v2208_v2  ;;  %3239 = vmatprep.mubr.msk.bf16.mxu1 %vm3557_vm1, %v3556_v13 }
 0xbb2   : > { %3249 = vmatprep.subr.bf16.mxu1 %v3556_v13 }
 0xbb3   : > { %v1972_v4 = vpop.f32.mrb[36].mxu0 }
 0xbb4   : > { %v1973_v5 = vadd.f32 %v2929_v3, %v1972_v4  ;;  %v3207_v6 = vpop.f32.mrb[37].mxu0 }
 0xbb5   : > { %v1975_v7 = vpop.f32.mrb[38].mxu0 }
 0xbb6   : > { %v2085_v8 = vpack.c.bf16 %v1973_v5, %v1973_v5  ;;  %v3208_v9 = vpop.f32.mrb[39].mxu0 }
 0xbb7   : > { %v2959_v9 = vld [vmem:[%s4212_s9 + $0x1] ss:$0 sm:$0xff] }
 0xbb8   : > { %v2138_v11 = vsel %vm1134_vm2, %v2085_v8, 0 }
 0xbb9   : > { %3232 = vmatpush3.bf16.xpose.msra.mxu0 %v2138_v11 }
 0xbba   : > { %3243 = vmatprep.subr.bf16.mxu0 %v3556_v13 }
 0xbbb   : > { %v2076_v15 = vpop.f32.mrb[40].mxu0 }
 0xbbc   : > { %v2077_v16 = vadd.f32 %v2931_v12, %v2076_v15  ;;  %v3223_v18 = vpop.f32.mrb[41].mxu0 }
 0xbbd   : > { %v2079_v19 = vpop.f32.mrb[42].mxu0 }
 0xbbe   : > { %v2087_v21 = vpack.c.bf16 %v2077_v16, %v2077_v16  ;;  %v3224_v24 = vpop.f32.mrb[43].mxu0 }
 0xbc0   : > { %v2254_v22 = vsel %vm1255_vm3, %v2087_v21, 0  ;;  %3234 = vmatmul.mubr.msk.bf16.vlgmr.msra.gmra.mrb[44].mxu0 %vm1134_vm2, %v2083_v20 }
 0xbc1   : > { %3244 = vmatpush3.bf16.msra.mxu0 %v2254_v22  ;;  %3245 = vmatprep.mubr.msk.bf16.mxu0 %vm3557_vm1, %v3556_v13 }
 0xbc2   : > { %3255 = vmatprep.subr.bf16.mxu0 %v3556_v13 }
 0xc83   : > { %v2128_v23 = vpop.f32.mrb[36].mxu1 }
 0xc84   : > { %v2129_v25 = vadd.f32 %v3944_v17, %v2128_v23  ;;  %v3229_v26 = vpop.f32.mrb[37].mxu1  ;;  %v3376_v23 = vld [vmem:[#allocation6 + $0x10] sm:$0xff]  }
 0xc85   : > { %v2131_v27 = vpop.f32.mrb[38].mxu1 }
 0xc86   : > { %v3230_v28 = vpop.f32.mrb[39].mxu1  ;;  %v2180_v29 = vsel %vm1227_vm4, %v2129_v25, -inf }
 0xc87   : > { %2181 = vmax.xlane.f32.xlu0 %v2180_v29  ;;  %v2962_v29 = vld [vmem:[%s4213_s10 + $0x1] ss:$0 sm:$0xff] }
 0xc93   : > { %v2174_v31 = vpop.f32.mrb[44].mxu0 }
 0xc94   : > { %v2175_v32 = vadd.f32 %v3944_v17, %v2174_v31  ;;  %v3235_v33 = vpop.f32.mrb[45].mxu0 }
 0xc95   : > { %v2177_v34 = vpop.f32.mrb[46].mxu0 }
 0xc96   : > { %v3236_v35 = vpop.f32.mrb[47].mxu0  ;;  %v2183_v36 = vsel %vm1227_vm4, %v2175_v32, -inf }
 0xc97   : > { %2184 = vmax.xlane.f32.xlu1 %v2183_v36  ;;  %v3378_v36 = vld [vmem:[%s4217_s14 + $0x20] sm:$0xff]  }
 0xd14   : > { %v2182_v37 = vpop.xlane.xlu0 %2181 }
 0xd15   : > { %v2186_v38 = vsub.f32 %v2129_v25, %v2182_v37  ;;  %v3377_v25 = vld [vmem:[#allocation6 + $0x18] sm:$0xff]   ;;  %v3379_v37 = vld [vmem:[%s4217_s14 + $0x28] sm:$0xff]  }
 0xd17   : > { %v2188_v39 = vmul.f32 1.442695, %v2186_v38  ;;  %v3380_v38 = vld [vmem:[%s4217_s14 + $0x30] sm:$0xff]  }
 0xd19   : > { %3402 = vpow2.f32 %v2188_v39  ;;  %v3381_v39 = vld [vmem:[%s4217_s14 + $0x38] sm:$0xff]  }
 0xd23   : > { %v3403_v40 = vpop.eup %3402 }
 0xd24   : > { %v2185_v41 = vpop.xlane.xlu1 %2184  ;;  %v2192_v42 = vsel %vm1227_vm4, %v3403_v40, 0.0 }
 0xd25   : > { %v2187_v43 = vsub.f32 %v2175_v32, %v2185_v41  ;;  %2193 = vadd.xlane.f32.xlu0 %v2192_v42  ;;  %v2963_v32 = vld [vmem:[%s4214_s11 + $0x1] ss:$0 sm:$0xff] }
 0xd27   : > { %v2190_v44 = vmul.f32 1.442695, %v2187_v43 }
 0xd29   : > { %3404 = vpow2.f32 %v2190_v44 }
 0xd33   : > { %v3405_v45 = vpop.eup %3404 }
 0xd34   : > { %v2195_v17 = vsel %vm1227_vm4, %v3405_v45, 0.0 }
 0xd35   : > { %2196 = vadd.xlane.f32.xlu1 %v2195_v17 }
 0xdb2   : > { %v2194_v46 = vpop.xlane.xlu0 %2193 }
 0xdb3   : > { %3406 = vrcp.f32 %v2194_v46 }
 0xdbd   : > { %v3407_v47 = vpop.eup %3406 }
 0xdbe   : > { %v2200_v48 = vmul.f32 %v3407_v47, %v3403_v40  ;;  %v2965_v40 = vld [vmem:[%s4216_s13 + $0x1] ss:$0 sm:$0xff] }
 0xdc0   : > { %v2202_v49 = vpack.c.bf16 %v2200_v48, %v2200_v48 }
 0xdc2   : > { %3240 = vmatmul.mubr.msk.bf16.vlgmr.msra.gmra.mrb[40].mxu1 %vm1227_vm4, %v2202_v49  ;;  %v2197_v50 = vpop.xlane.xlu1 %2196 }
 0xdc3   : > { %3408 = vrcp.f32 %v2197_v50  ;;  %3251 = vmatprep.mubr.msk.bf16.mxu1 %vm3557_vm1, %v3556_v13  ;;  %3250 = vmatpush3.bf16.msra.mxu1 %v3374_v54 }
 0xdc4   : > { %3261 = vmatprep.subr.bf16.mxu1 %v3556_v13 }
 0xdcd   : > { %v3409_v51 = vpop.eup %3408 }
 0xdce   : > { %v2201_v52 = vmul.f32 %v3409_v51, %v3405_v45 }
 0xdd0   : > { %v2203_v53 = vpack.c.bf16 %v2201_v52, %v2201_v52 }
 0xdd2   : > { %3246 = vmatmul.mubr.msk.bf16.vlgmr.msra.gmra.mrb[48].mxu0 %vm1227_vm4, %v2203_v53 }
 0xdd3   : > { %3257 = vmatprep.mubr.msk.bf16.mxu0 %vm3557_vm1, %v3556_v13  ;;  %3256 = vmatpush3.bf16.msra.mxu0 %v3375_v55 }
 0xdd4   : > { %3269 = vmatprep.subr.bf16.mxu0 %v3556_v13 }
 0xe95   : > { %v2244_v56 = vpop.f32.mrb[40].mxu1 }
 0xe96   : > { %v2296_v57 = vpack.c.bf16 %v2244_v56, %v2244_v56  ;;  %v3241_v58 = vpop.f32.mrb[41].mxu1 }
 0xe97   : > { %v2247_v59 = vpop.f32.mrb[42].mxu1 }
 0xe98   : > { %v3242_v60 = vpop.f32.mrb[43].mxu1  ;;  %3252 = vmatmul.mubr.msk.bf16.vlgmr.msra.gmra.mrb[44].mxu1 %vm1134_vm2, %v2296_v57 }
 0xe99   : > { %3265 = vmatprep.mubr.msk.bf16.mxu1 %vm3557_vm1, %v3556_v13  ;;  %3262 = vmatpush3.bf16.msra.mxu1 %v3376_v23 }
 0xe9a   : > { %3263 = vmatprep.subr.bf16.mxu1 %v3556_v13 }
 0xe9d   : > { %3264 = vmatpush3.bf16.msra.mxu1 %v3377_v25 }
 0xe9e   : > { %3281 = vmatprep.subr.bf16.mxu1 %v3556_v13 }
 0xea5   : > { %v2290_v61 = vpop.f32.mrb[48].mxu0 }
 0xea6   : > { %v2297_v62 = vpack.c.bf16 %v2290_v61, %v2290_v61  ;;  %v3247_v63 = vpop.f32.mrb[49].mxu0 }
 0xea7   : > { %v2293_v0 = vpop.f32.mrb[50].mxu0 }
 0xea8   : > { %v3248_v1 = vpop.f32.mrb[51].mxu0  ;;  %3258 = vmatmul.mubr.msk.bf16.vlgmr.msra.gmra.mrb[52].mxu0 %vm1134_vm2, %v2297_v62 }
 0xea9   : > { %3277 = vmatprep.mubr.msk.bf16.mxu0 %vm3557_vm1, %v3556_v13  ;;  %3270 = vmatpush3.bf16.msra.mxu0 %v3378_v36 }
 0xeaa   : > { %3271 = vmatprep.subr.bf16.mxu0 %v3556_v13 }
 0xead   : > { %3272 = vmatpush3.bf16.msra.mxu0 %v3379_v37 }
 0xeae   : > { %3273 = vmatprep.subr.bf16.mxu0 %v3556_v13 }
 0xeb1   : > { %3274 = vmatpush3.bf16.msra.mxu0 %v3380_v38 }
 0xeb2   : > { %3275 = vmatprep.subr.bf16.mxu0 %v3556_v13 }
 0xeb5   : > { %3276 = vmatpush3.bf16.msra.mxu0 %v3381_v39 }
 0xf6b   : > { %v2346_v2 = vpop.f32.mrb[44].mxu1 }
 0xf6c   : > { %v3253_v3 = vpop.f32.mrb[45].mxu1  ;;  %v2401_v7 = vsel %vm710_vm0, %v2346_v2, 0.0 }
 0xf6d   : > { %v2349_v4 = vpop.f32.mrb[46].mxu1 }
 0xf6e   : > { %v3254_v5 = vpop.f32.mrb[47].mxu1 }
 0xf7b   : > { %v2395_v6 = vpop.f32.mrb[52].mxu0 }
 0xf7c   : > { %v2402_v8 = vsel %vm710_vm0, %v2395_v6, 0.0  ;;  %v3259_v10 = vpop.f32.mrb[53].mxu0 }
 0xf7d   : > { %v2403_v11 = vadd.f32 %v2402_v8, %v2401_v7  ;;  %v2398_v12 = vpop.f32.mrb[54].mxu0  ;;  %v2978_v7 = vld [vmem:[%s4257_s29 + $0x1] ss:$0 sm:$0xff] }
 0xf7e   : > { %v3260_v14 = vpop.f32.mrb[55].mxu0 }
 0xf7f   : > { %v2412_v15 = vadd.f32 %v2959_v9, %v2403_v11 }
 0xf81   : > { %v2413_v16 = vadd.f32 %v2412_v15, %v4034_v30 }
 0xf83   : > { %v2418_v18 = vsel %vm710_vm0, %v2413_v16, 0.0 }
 0xf84   : > { %2419 = vadd.xlane.f32.xlu0 %v2418_v18 }
0x1011   : > { %v2420_v19 = vpop.xlane.xlu0 %2419 }
0x1012   : > { %v2421_v20 = vmul.f32 0.03125, %v2420_v19 }
0x1014   : > { %v2422_v21 = vsub.f32 %v2413_v16, %v2421_v20 }
0x1016   : > { %v2423_v24 = vmul.f32 %v2422_v21, %v2422_v21 }
0x1018   : > { %v2424_v22 = vsel %vm710_vm0, %v2423_v24, 0.0  ;;  %v3382_v24 = vld [vmem:[#allocation7] sm:$0xff]  }
0x1019   : > { %2425 = vadd.xlane.f32.xlu1 %v2424_v22  ;;  %v3383_v22 = vld [vmem:[#allocation7 + $0x8] sm:$0xff]  }
0x10a6   : > { %v2426_v26 = vpop.xlane.xlu1 %2425 }
0x10a7   : > { %v2427_v30 = vmul.f32 0.03125, %v2426_v26 }
0x10a9   : > { %v2428_v27 = vadd.f32 1e-12, %v2427_v30 }
0x10ab   : > { %3410 = vrsqrt.f32 %v2428_v27  ;;  %v2986_v27 = vld [vmem:[%s4258_s4 + $0x1] ss:$0 sm:$0xff] }
0x10b5   : > { %v3411_v28 = vpop.eup %3410 }
0x10b6   : > { %v2430_v31 = vmul.f32 %v3411_v28, %v2422_v21 }
0x10b8   : > { %v2437_v33 = vmul.f32 %v2962_v29, %v2430_v31  ;;  %v2987_v29 = vld [vmem:[%s4259_s3 + $0x1] ss:$0 sm:$0xff] }
0x10ba   : > { %v2444_v34 = vadd.f32 %v2963_v32, %v2437_v33  ;;  %v2988_v33 = vld [vmem:[%s4260_s25] ss:$0 sm:$0xff] }
0x10bc   : > { %v2445_v35 = vpack.c.bf16 %v2444_v34, %v2444_v34 }
0x10be   : > { %3266 = vmatmul.mubr.msk.bf16.vlgmr.msra.gmra.mrb[48].mxu1 %vm710_vm0, %v2445_v35 }
0x10bf   : > { %3285 = vmatprep.mubr.msk.bf16.mxu1 %vm3557_vm1, %v3556_v13  ;;  %3282 = vmatpush3.bf16.msra.mxu1 %v3382_v24 }
0x10c0   : > { %3283 = vmatprep.subr.bf16.mxu1 %v3556_v13 }
0x10c3   : > { %3284 = vmatpush3.bf16.msra.mxu1 %v3383_v22 }
0x1191   : > { %v2508_v41 = vpop.f32.mrb[48].mxu1 }
0x1192   : > { %v2509_v42 = vadd.f32 %v2965_v40, %v2508_v41  ;;  %v3267_v43 = vpop.f32.mrb[49].mxu1 }
0x1193   : > { %v2511_v44 = vpop.f32.mrb[50].mxu1 }
0x1194   : > { %v2515_v45 = vmul.f32 0.70710677, %v2509_v42  ;;  %v3268_v17 = vpop.f32.mrb[51].mxu1  ;;  %v2514_v3 = vmul.f32 0.5, %v2509_v42 }
0x1196   : > { %v2516_v46 = vand.u32 2147483647, %v2515_v45  ;;  %vm2536_vm7 = vcmp.lt.f32.partialorder %v2515_v45, 0.0 }
0x1198   : > { %v2517_v47 = vmul.f32 0.3275911, %v2516_v46  ;;  %v2530_v49 = vmul.f32 %v2516_v46, %v2516_v46 }
0x119a   : > { %v2518_v48 = vadd.f32 1.0, %v2517_v47  ;;  %v2531_v51 = vsub.f32 0.0, %v2530_v49 }
0x119c   : > { %3412 = vrcp.f32 %v2518_v48  ;;  %v2532_v54 = vmul.f32 1.442695, %v2531_v51 }
0x119e   : > { %3414 = vpow2.f32 %v2532_v54 }
0x11a6   : > { %v3413_v50 = vpop.eup %3412 }
0x11a7   : > { %v2521_v52 = vmul.f32 1.0614054, %v3413_v50 }
0x11a8   : > { %v3415_v62 = vpop.eup %3414 }
0x11a9   : > { %v2522_v53 = vadd.f32 -1.4531521, %v2521_v52 }
0x11ab   : > { %v2523_v55 = vmul.f32 %v3413_v50, %v2522_v53 }
0x11ad   : > { %v2524_v56 = vadd.f32 1.4214138, %v2523_v55 }
0x11af   : > { %v2525_v57 = vmul.f32 %v3413_v50, %v2524_v56 }
0x11b1   : > { %v2526_v58 = vadd.f32 -0.28449672, %v2525_v57 }
0x11b3   : > { %v2527_v59 = vmul.f32 %v3413_v50, %v2526_v58 }
0x11b5   : > { %v2528_v60 = vadd.f32 0.2548296, %v2527_v59 }
0x11b7   : > { %v2529_v61 = vmul.f32 %v3413_v50, %v2528_v60 }
0x11b9   : > { %v2534_v63 = vmul.f32 %v3415_v62, %v2529_v61 }
0x11bb   : > { %v2535_v0 = vsub.f32 1.0, %v2534_v63 }
0x11bd   : > { %v2537_v1 = vsub.f32 0.0, %v2535_v0 }
0x11bf   : > { %v2538_v2 = vsel %vm2536_vm7, %v2537_v1, %v2535_v0 }
0x11c0   : > { %v2539_v4 = vadd.f32 1.0, %v2538_v2 }
0x11c2   : > { %v2540_v5 = vmul.f32 %v2539_v4, %v2514_v3 }
0x11c4   : > { %v2541_v6 = vpack.c.bf16 %v2540_v5, %v2540_v5 }
0x11c6   : > { %3278 = vmatmul.mubr.msk.bf16.vlgmr.msra.gmra.mrb[56].mxu0 %vm1624_vm6, %v2541_v6 }
0x1299   : > { %v2620_v8 = vpop.f32.mrb[56].mxu0 }
0x129a   : > { %v2621_v9 = vadd.f32 %v2978_v7, %v2620_v8  ;;  %v3279_v10 = vpop.f32.mrb[57].mxu0 }
0x129b   : > { %v2623_v11 = vpop.f32.mrb[58].mxu0 }
0x129c   : > { %v3280_v12 = vpop.f32.mrb[59].mxu0  ;;  %v2626_v14 = vadd.f32 %v2621_v9, %v2444_v34 }
0x129e   : > { %v2631_v15 = vsel %vm710_vm0, %v2626_v14, 0.0 }
0x129f   : > { %2632 = vadd.xlane.f32.xlu0 %v2631_v15 }
0x132c   : > { %v2633_v16 = vpop.xlane.xlu0 %2632 }
0x132d   : > { %v2634_v18 = vmul.f32 0.03125, %v2633_v16 }
0x132f   : > { %v2635_v19 = vsub.f32 %v2626_v14, %v2634_v18 }
0x1331   : > { %v2636_v20 = vmul.f32 %v2635_v19, %v2635_v19 }
0x1333   : > { %v2637_v21 = vsel %vm710_vm0, %v2636_v20, 0.0 }
0x1334   : > { %2638 = vadd.xlane.f32.xlu1 %v2637_v21 }
0x13c1   : > { %v2639_v23 = vpop.xlane.xlu1 %2638 }
0x13c2   : > { %v2640_v25 = vmul.f32 0.03125, %v2639_v23 }
0x13c4   : > { %v2641_v26 = vadd.f32 1e-12, %v2640_v25 }
0x13c6   : > { %3416 = vrsqrt.f32 %v2641_v26 }
0x13d0   : > { %v3417_v30 = vpop.eup %3416 }
0x13d1   : > { %v2643_v28 = vmul.f32 %v3417_v30, %v2635_v19 }
0x13d3   : > { %v2650_v31 = vmul.f32 %v2986_v27, %v2643_v28 }
0x13d5   : > { %v2657_v32 = vadd.f32 %v2987_v29, %v2650_v31 }
0x13d7   : > { %v2658_v13 = vpack.c.bf16 %v2657_v32, %v2657_v32 }
0x13d9   : > { %3286 = vmatmul.mubr.msk.bf16.vlgmr.msra.gmra.mrb[52].mxu1 %vm710_vm0, %v2658_v13 }
0x14ac   : > { %v2719_v34 = vpop.f32.mrb[52].mxu1 }
0x14ad   : > { %v2720_v35 = vadd.f32 %v2988_v33, %v2719_v34  ;;  %v3287_v36 = vpop.f32.mrb[53].mxu1 }
0x14ae   : > { %v2722_v37 = vpop.f32.mrb[54].mxu1 }
0x14af   : > { %v2725_v38 = vmax.f32 %v2720_v35, 0.0  ;;  %v3288_v39 = vpop.f32.mrb[55].mxu1 }
0x14b1   : > { %2726 = vst.msk [vmem:[%s695_s2] sm:$0xff] %vm710_vm0, %v2725_v38 }
0x14b2 PF: > { %s4262_s26 = sld [smem:[#allocation12_spill]] }
0x14b8   : > { %s33_s1 = sadd.s32 1, %s4262_s26  }
0x14b9   : > { %p30_p6 = scmp.ge.s32.totalorder %s33_s1, 4  }
0x14bb   :  { %32 = sbr.rel (!%p30_p6) target bundleno = 14 (0xe), region = 162 }
0x14c2   :  { %2746 = vsyncpa [#allocation3], 1 }
0x14c3   :  { %2748 = vsyncpa [#allocation3 + $0x1], 1 }
0x14c4   :  { %2749 = vsyncpa [#allocation5], 1 }
0x14c5   :  { %2750 = vsyncpa [#allocation8], 1 }

</bundles_post_ra>
